<compile_context>
chip_gen: v7x
topology: tpu7x:2x2x1
jax: 0.10.0
libtpu: 0.0.40
codegen_flags: <defaults>
</compile_context>

<pallas_src>
from functools import partial

import numpy as np
import jax
import jax.numpy as jnp
from jax.experimental import pallas as pl
from jax.experimental.pallas import tpu as pltpu


# ------------------------------------------------------------------ helpers ---

def _layer_norm(x, gamma, beta, eps=1e-5):
    mu = jnp.mean(x, axis=-1, keepdims=True)
    var = jnp.mean(jnp.square(x - mu), axis=-1, keepdims=True)
    return (x - mu) * jax.lax.rsqrt(var + eps) * gamma + beta


# ------------------------------------------------------------------- kernel ---

def fused_encoder_kernel(tok_ref, emb_ref, pe_ref,
                         wqkv_ref, bqkv_ref, w1_ref, b1_ref, w2_ref, b2_ref,
                         g1_ref, be1_ref, g2_ref, be2_ref,
                         wfc_ref, bfc_ref, o_ref, acc_ref):
    """One seq-position tile per grid step; all layers fused; pooled head at the end.

    Row layout inside a tile: r = s_local * N + n  (seq-major, matches
    src.permute(1, 0) in the PyTorch module).
    """
    step = pl.program_id(0)
    n_steps = pl.num_programs(0)

    TR = tok_ref.shape[0]            # tile_s * N rows in this tile
    V, D = emb_ref.shape
    tile_s = pe_ref.shape[0]
    N = TR // tile_s
    L = wqkv_ref.shape[0]
    sqrt_d = np.float32(np.sqrt(D))

    @pl.when(step == 0)
    def _():
        acc_ref[...] = jnp.zeros_like(acc_ref)

    # --- embedding gather (one-hot matmul; vocab is tiny and lives in VMEM) ---
    # TODO(synk): for a large vocab replace this with a pl.Element / DMA row gather.
    tok = tok_ref[...]                                                  # (TR, 1) int32
    onehot = (tok == jax.lax.broadcasted_iota(jnp.int32, (TR, V), 1)).astype(jnp.float32)
    x = jnp.dot(onehot, emb_ref[...], preferred_element_type=jnp.float32)   # (TR, D)

    # scale + positional encoding (pe is per seq position, broadcast over N)
    x = (x.reshape(tile_s, N, D) * sqrt_d + pe_ref[...][:, None, :]).reshape(TR, D)

    # --- encoder layers: dynamic indexing of stacked weights in a fori_loop ---
    def layer_body(l, x):
        # fused Q|K|V projection (bf16 operands, f32 accumulation)
        qkv = jnp.dot(x.astype(jnp.bfloat16), wqkv_ref[l],
                      preferred_element_type=jnp.float32) + bqkv_ref[l]     # (TR, 3D)
        q = jnp.maximum(qkv[:, :D], 0.0) + 1e-6
        k = jnp.maximum(qkv[:, D:2 * D], 0.0) + 1e-6
        v = qkv[:, 2 * D:]

        # block-diagonal linear attention: mixes only rows sharing a seq position.
        q3 = q.reshape(tile_s, N, D)
        k3 = k.reshape(tile_s, N, D)
        v3 = v.reshape(tile_s, N, D)
        # scores[s, n, m] = q[s, n, :] . k[s, m, :]
        scores = jax.lax.dot_general(q3, k3, (((2,), (2,)), ((0,), (0,))),
                                     preferred_element_type=jnp.float32)    # (s, N, N)
        inv_den = pl.reciprocal(jnp.sum(scores, axis=-1, keepdims=True) + 1e-6,
                                approx=True)                                # (s, N, 1)
        attn3 = jax.lax.dot_general(scores, v3, (((2,), (1,)), ((0,), (0,))),
                                    preferred_element_type=jnp.float32)     # (s, N, D)
        attn = (attn3 * inv_den).reshape(TR, D)

        # residual + LayerNorm 1 (f32)
        src = _layer_norm(x + attn, g1_ref[l], be1_ref[l])

        # feed-forward (bf16 operands, f32 accumulation)
        h = jnp.maximum(jnp.dot(src.astype(jnp.bfloat16), w1_ref[l],
                                preferred_element_type=jnp.float32) + b1_ref[l], 0.0)
        ff = jnp.dot(h.astype(jnp.bfloat16), w2_ref[l],
                     preferred_element_type=jnp.float32) + b2_ref[l]

        # residual + LayerNorm 2 (f32)
        return _layer_norm(src + ff, g2_ref[l], be2_ref[l])

    x = jax.lax.fori_loop(0, L, layer_body, x)

    # --- mean-pool accumulation: sum over this tile's seq positions per batch row ---
    acc_ref[...] += jnp.sum(x.reshape(tile_s, N, D), axis=0)                # (N, D)

    # --- head at the last tile: mean over S then fc (lane-dense padded output) ---
    @pl.when(step == n_steps - 1)
    def _():
        inv_len = 1.0 / (tile_s * n_steps)
        m = acc_ref[...] * inv_len                                          # (N, D)
        o_ref[...] = jnp.dot(m.astype(jnp.bfloat16), wfc_ref[...],
                             preferred_element_type=jnp.float32) + bfc_ref[...]


# ----------------------------------------------------------------- wrappers ---

def pack_params(params):
    """One-time packing: concat q/k/v, stack per-layer tensors, bf16 MXU weights."""
    ls = params["layers"]
    f32, bf16 = jnp.float32, jnp.bfloat16
    stk = lambda name, dt: jnp.stack([lp[name] for lp in ls]).astype(dt)
    return dict(
        emb=params["emb"].astype(f32),
        wqkv=jnp.stack([jnp.concatenate([lp["wq"], lp["wk"], lp["wv"]], axis=1)
                        for lp in ls]).astype(bf16),
        bqkv=jnp.stack([jnp.concatenate([lp["bq"], lp["bk"], lp["bv"]], axis=1)
                        for lp in ls]).astype(f32),
        w1=stk("w1", bf16), b1=stk("b1", f32),
        w2=stk("w2", bf16), b2=stk("b2", f32),
        g1=stk("g1", f32), be1=stk("be1", f32),
        g2=stk("g2", f32), be2=stk("be2", f32),
        wfc=params["wfc"].astype(bf16), bfc=params["bfc"].astype(f32),
    )


@partial(jax.jit, static_argnames=("tile_s",))
def model_forward(tokens, packed, pe, tile_s=8):
    N, S = tokens.shape                    # (batch, seq)
    D = packed["emb"].shape[1]
    O = packed["wfc"].shape[1]
    O_pad = max(128, ((O + 127) // 128) * 128)     # lane-dense fc output

    # tile_s seq positions per grid step; fall back to a single tile if it
    # would violate the (8,128) block constraints.
    if S % tile_s != 0 or tile_s % 8 != 0:
        tile_s = S
    num_tiles = S // tile_s
    TR = tile_s * N

    # time-major flattening: row r = s*N + n  (matches src.permute(1, 0))
    tok_flat = tokens.T.reshape(S * N, 1).astype(jnp.int32)
    pe_s = pe[:S, 0, :].astype(jnp.float32)                       # (S, D), no N-repeat

    wfc_p = jnp.zeros((D, O_pad), packed["wfc"].dtype).at[:, :O].set(packed["wfc"])
    bfc_p = jnp.zeros((1, O_pad), jnp.float32).at[:, :O].set(packed["bfc"])

    def resident(a):                        # full block, constant index_map
        nd = a.ndim
        return pl.BlockSpec(a.shape, lambda i, _n=nd: (0,) * _n)

    weight_args = (packed["wqkv"], packed["bqkv"], packed["w1"], packed["b1"],
                   packed["w2"], packed["b2"], packed["g1"], packed["be1"],
                   packed["g2"], packed["be2"], wfc_p, bfc_p)

    # VMEM budget: resident weights + embedding + double-buffered tiles + headroom,
    # clamped so it stays safe on v5e/v6e and within v7x's 64 MiB.
    resident_bytes = sum(int(a.size) * a.dtype.itemsize for a in weight_args)
    resident_bytes += int(packed["emb"].size) * packed["emb"].dtype.itemsize
    tile_bytes = 2 * (TR * (1 + D) + tile_s * D) * 4
    vmem_limit = int(min(48 * 2 ** 20,
                         max(16 * 2 ** 20,
                             2 * resident_bytes + tile_bytes + 8 * 2 ** 20)))

    out_pad = pl.pallas_call(
        fused_encoder_kernel,
        grid=(num_tiles,),
        in_specs=[
            pl.BlockSpec((TR, 1), lambda i: (i, 0)),          # tokens (seq-tile)
            resident(packed["emb"]),                          # embedding table
            pl.BlockSpec((tile_s, D), lambda i: (i, 0)),      # positional encoding
            *[resident(a) for a in weight_args],              # resident weights
        ],
        out_specs=pl.BlockSpec((N, O_pad), lambda i: (0, 0)),  # resident output
        out_shape=jax.ShapeDtypeStruct((N, O_pad), jnp.float32),
        scratch_shapes=[pltpu.VMEM((N, D), jnp.float32)],      # pooled-sum accumulator
        compiler_params=pltpu.CompilerParams(
            dimension_semantics=("arbitrary",),
            vmem_limit_bytes=vmem_limit),
    )(tok_flat, packed["emb"], pe_s, *weight_args)

    return out_pad[:, :O]


# ---------------------------------------------------------------- reference ---

def ref_forward(tokens, params, pe, d_model):
    """Pure-JAX f32 reference, faithful to the PyTorch einsum (KV-form) semantics."""
    src = tokens.T                                              # (S, N)
    x = params["emb"][src] * np.sqrt(d_model)                   # (S, N, D)
    x = x + pe[: x.shape[0]]
    for lp in params["layers"]:
        q = jnp.maximum(jnp.einsum("bnd,de->bne", x, lp["wq"]) + lp["bq"], 0.0) + 1e-6
        k = jnp.maximum(jnp.einsum("bnd,de->bne", x, lp["wk"]) + lp["bk"], 0.0) + 1e-6
        v = jnp.einsum("bnd,de->bne", x, lp["wv"]) + lp["bv"]
        kv = jnp.einsum("bnd,bne->bde", k, v)
        z = 1.0 / (jnp.einsum("bnd,bd->bn", q, k.sum(axis=1)) + 1e-6)
        attn = jnp.einsum("bnd,bde,bn->bne", q, kv, z)
        x = _layer_norm(x + attn, lp["g1"][None], lp["be1"][None])
        h = jnp.maximum(jnp.einsum("bnd,df->bnf", x, lp["w1"]) + lp["b1"], 0.0)
        ff = jnp.einsum("bnf,fd->bnd", h, lp["w2"]) + lp["b2"]
        x = _layer_norm(x + ff, lp["g2"][None], lp["be2"][None])
    x = jnp.transpose(x, (1, 0, 2))                             # (N, S, D)
    m = jnp.mean(x, axis=1)
    return m @ params["wfc"] + params["bfc"][0]


# ------------------------------------------------------------------- params ---

def make_positional_encoding(max_len, d_model):
    position = np.arange(max_len, dtype=np.float32)[:, None]
    div_term = np.exp(np.arange(0, d_model, 2, dtype=np.float32)
                      * (-np.log(10000.0) / d_model))
    pe = np.zeros((max_len, d_model), np.float32)
    pe[:, 0::2] = np.sin(position * div_term)
    pe[:, 1::2] = np.cos(position * div_term)
    return jnp.asarray(pe[:, None, :])                          # (max_len, 1, d_model)


def _linear(key, fan_in, fan_out):
    kw, kb = jax.random.split(key)
    bound = 1.0 / np.sqrt(fan_in)
    w = jax.random.uniform(kw, (fan_in, fan_out), jnp.float32, -bound, bound)
    b = jax.random.uniform(kb, (1, fan_out), jnp.float32, -bound, bound)
    return w, b


def init_params(key, input_dim, output_dim, d_model, num_layers, dim_ff):
    keys = jax.random.split(key, 2 + num_layers)
    params = {"emb": jax.random.normal(keys[0], (input_dim, d_model), jnp.float32)}
    layers = []
    for li in range(num_layers):
        ks = jax.random.split(keys[1 + li], 5)
        wq, bq = _linear(ks[0], d_model, d_model)
        wk, bk = _linear(ks[1], d_model, d_model)
        wv, bv = _linear(ks[2], d_model, d_model)
        w1, b1 = _linear(ks[3], d_model, dim_ff)
        w2, b2 = _linear(ks[4], dim_ff, d_model)
        layers.append(dict(
            wq=wq, bq=bq, wk=wk, bk=bk, wv=wv, bv=bv,
            w1=w1, b1=b1, w2=w2, b2=b2,
            g1=jnp.ones((1, d_model), jnp.float32), be1=jnp.zeros((1, d_model), jnp.float32),
            g2=jnp.ones((1, d_model), jnp.float32), be2=jnp.zeros((1, d_model), jnp.float32),
        ))
    params["layers"] = layers
    wfc, bfc = _linear(keys[-1], d_model, output_dim)
    params["wfc"], params["bfc"] = wfc, bfc
    return params


# --------------------------------------------------------------------- main ---

if __name__ == "__main__":
    input_dim = 16        # vocab size
    output_dim = 4
    d_model = 32
    num_layers = 2
    dim_feedforward = 64
    batch, seq = 2, 16    # seq=16 with tile_s=8 -> 2 grid steps (exercises the accumulator)

    key = jax.random.PRNGKey(0)
    k_tok, k_par = jax.random.split(key)
    tokens = jax.random.randint(k_tok, (batch, seq), 0, input_dim, dtype=jnp.int32)
    params = init_params(k_par, input_dim, output_dim, d_model, num_layers, dim_feedforward)
    pe = make_positional_encoding(5000, d_model)
    packed = pack_params(params)          # one-time weight packing (stack + qkv concat, bf16)

    out = jax.block_until_ready(model_forward(tokens, packed, pe))
    ref = jax.block_until_ready(ref_forward(tokens, params, pe, d_model))
    np.testing.assert_allclose(np.asarray(out), np.asarray(ref), rtol=2e-2, atol=2e-2)
    assert out.shape == (batch, output_dim)
    print("KERNEL_OK")
</pallas_src>

<mosaic_0001>
module attributes {stable_mosaic.version = 11 : i64} {
  func.func @fused_encoder_kernel(%arg0: i32, %arg1: memref<16x1xi32, #tpu.memory_space<vmem>>, %arg2: memref<16x32xf32, #tpu.memory_space<vmem>>, %arg3: memref<8x32xf32, #tpu.memory_space<vmem>>, %arg4: memref<2x32x96xbf16, #tpu.memory_space<vmem>>, %arg5: memref<2x1x96xf32, #tpu.memory_space<vmem>>, %arg6: memref<2x32x64xbf16, #tpu.memory_space<vmem>>, %arg7: memref<2x1x64xf32, #tpu.memory_space<vmem>>, %arg8: memref<2x64x32xbf16, #tpu.memory_space<vmem>>, %arg9: memref<2x1x32xf32, #tpu.memory_space<vmem>>, %arg10: memref<2x1x32xf32, #tpu.memory_space<vmem>>, %arg11: memref<2x1x32xf32, #tpu.memory_space<vmem>>, %arg12: memref<2x1x32xf32, #tpu.memory_space<vmem>>, %arg13: memref<2x1x32xf32, #tpu.memory_space<vmem>>, %arg14: memref<32x128xbf16, #tpu.memory_space<vmem>>, %arg15: memref<1x128xf32, #tpu.memory_space<vmem>>, %arg16: memref<2x128xf32, #tpu.memory_space<vmem>>, %arg17: memref<2x32xf32, #tpu.memory_space<vmem>>) attributes {dimension_semantics = [#tpu.dimension_semantics<arbitrary>], iteration_bounds = array<i64: 2>, scalar_prefetch = 0 : i64, scratch_operands = 1 : i64, tpu.core_type = #tpu.core_type<tc>, window_params = [{transform_indices = @transform_0, window_bounds = array<i64: 16, 1>}, {pipeline_mode = #tpu.pipeline_mode<synchronous>, transform_indices = @transform_1, window_bounds = array<i64: 16, 32>}, {transform_indices = @transform_2, window_bounds = array<i64: 8, 32>}, {pipeline_mode = #tpu.pipeline_mode<synchronous>, transform_indices = @transform_3, window_bounds = array<i64: 2, 32, 96>}, {pipeline_mode = #tpu.pipeline_mode<synchronous>, transform_indices = @transform_4, window_bounds = array<i64: 2, 1, 96>}, {pipeline_mode = #tpu.pipeline_mode<synchronous>, transform_indices = @transform_5, window_bounds = array<i64: 2, 32, 64>}, {pipeline_mode = #tpu.pipeline_mode<synchronous>, transform_indices = @transform_6, window_bounds = array<i64: 2, 1, 64>}, {pipeline_mode = #tpu.pipeline_mode<synchronous>, transform_indices = @transform_7, window_bounds = array<i64: 2, 64, 32>}, {pipeline_mode = #tpu.pipeline_mode<synchronous>, transform_indices = @transform_8, window_bounds = array<i64: 2, 1, 32>}, {pipeline_mode = #tpu.pipeline_mode<synchronous>, transform_indices = @transform_9, window_bounds = array<i64: 2, 1, 32>}, {pipeline_mode = #tpu.pipeline_mode<synchronous>, transform_indices = @transform_10, window_bounds = array<i64: 2, 1, 32>}, {pipeline_mode = #tpu.pipeline_mode<synchronous>, transform_indices = @transform_11, window_bounds = array<i64: 2, 1, 32>}, {pipeline_mode = #tpu.pipeline_mode<synchronous>, transform_indices = @transform_12, window_bounds = array<i64: 2, 1, 32>}, {pipeline_mode = #tpu.pipeline_mode<synchronous>, transform_indices = @transform_13, window_bounds = array<i64: 32, 128>}, {pipeline_mode = #tpu.pipeline_mode<synchronous>, transform_indices = @transform_14, window_bounds = array<i64: 1, 128>}, {pipeline_mode = #tpu.pipeline_mode<synchronous>, transform_indices = @transform_15, window_bounds = array<i64: 2, 128>}]} {
    %c0_i32 = arith.constant 0 : i32
    %0 = arith.cmpi eq, %arg0, %c0_i32 : i32
    %1 = arith.extui %0 : i1 to i32
    %c0_i32_0 = arith.constant 0 : i32
    %2 = arith.cmpi ne, %1, %c0_i32_0 : i32
    scf.if %2 {
      %cst_16 = arith.constant 0.000000e+00 : f32
      %29 = vector.broadcast %cst_16 : f32 to vector<2x32xf32>
      %c0_17 = arith.constant 0 : index
      %c0_18 = arith.constant 0 : index
      %30 = vector.load %arg17[%c0_17, %c0_18] : memref<2x32xf32, #tpu.memory_space<vmem>>, vector<2x32xf32>
      tpu.vector_store %arg17[%c0_17, %c0_18], %29 {strides = array<i32>} : memref<2x32xf32, #tpu.memory_space<vmem>>, vector<2x32xf32>,
    } else {
    }
    %c0 = arith.constant 0 : index
    %c0_1 = arith.constant 0 : index
    %3 = vector.load %arg1[%c0, %c0_1] : memref<16x1xi32, #tpu.memory_space<vmem>>, vector<16x1xi32>
    %4 = tpu.iota {dimensions = array<i32: 1>} : vector<16x16xi32>
    %5 = vector.broadcast %3 : vector<16x1xi32> to vector<16x16xi32>
    %6 = arith.cmpi eq, %5, %4 : vector<16x16xi32>
    %7 = arith.extui %6 : vector<16x16xi1> to vector<16x16xi32>
    %8 = arith.sitofp %7 : vector<16x16xi32> to vector<16x16xf32>
    %c0_2 = arith.constant 0 : index
    %c0_3 = arith.constant 0 : index
    %9 = vector.load %arg2[%c0_2, %c0_3] : memref<16x32xf32, #tpu.memory_space<vmem>>, vector<16x32xf32>
    %cst = arith.constant dense<0.000000e+00> : vector<16x32xf32>
    %10 = tpu.matmul %8, %9, %cst {dimension_numbers = #tpu.dot_dimension_numbers<[1], [0], [0], [1], [0, 0, 1, 1], [], []>} : vector<16x16xf32>, vector<16x32xf32>, vector<16x32xf32> -> vector<16x32xf32>
    %11 = vector.shape_cast %10 : vector<16x32xf32> to vector<8x2x32xf32>
    %cst_4 = arith.constant 5.65685415 : f32
    %12 = vector.broadcast %cst_4 : f32 to vector<8x2x32xf32>
    %13 = arith.mulf %11, %12 : vector<8x2x32xf32>
    %c0_5 = arith.constant 0 : index
    %c0_6 = arith.constant 0 : index
    %14 = vector.load %arg3[%c0_5, %c0_6] : memref<8x32xf32, #tpu.memory_space<vmem>>, vector<8x32xf32>
    %15 = vector.shape_cast %14 : vector<8x32xf32> to vector<8x1x32xf32>
    %16 = vector.broadcast %15 : vector<8x1x32xf32> to vector<8x2x32xf32>
    %17 = arith.addf %13, %16 : vector<8x2x32xf32>
    %18 = vector.shape_cast %17 : vector<8x2x32xf32> to vector<16x32xf32>
    %c0_i32_7 = arith.constant 0 : i32
    %c2_i32 = arith.constant 2 : i32
    %19 = arith.addi %c0_i32_7, %c2_i32 : i32
    %c1_i32 = arith.constant 1 : i32
    %20 = scf.for %arg18 = %c0_i32_7 to %19 step %c1_i32 iter_args(%arg19 = %18) -> (vector<16x32xf32>)  : i32 {
      %29 = arith.truncf %arg19 : vector<16x32xf32> to vector<16x32xbf16>
      %30 = arith.index_cast %arg18 : i32 to index
      %c0_16 = arith.constant 0 : index
      %c0_17 = arith.constant 0 : index
      %31 = vector.load %arg4[%30, %c0_16, %c0_17] : memref<2x32x96xbf16, #tpu.memory_space<vmem>>, vector<1x32x96xbf16>
      %32 = vector.shape_cast %31 : vector<1x32x96xbf16> to vector<32x96xbf16>
      %cst_18 = arith.constant dense<0.000000e+00> : vector<16x96xf32>
      %33 = tpu.matmul %29, %32, %cst_18 {dimension_numbers = #tpu.dot_dimension_numbers<[1], [0], [0], [1], [0, 0, 1, 1], [], []>} : vector<16x32xbf16>, vector<32x96xbf16>, vector<16x96xf32> -> vector<16x96xf32>
      %34 = arith.index_cast %arg18 : i32 to index
      %c0_19 = arith.constant 0 : index
      %c0_20 = arith.constant 0 : index
      %35 = vector.load %arg5[%34, %c0_19, %c0_20] : memref<2x1x96xf32, #tpu.memory_space<vmem>>, vector<1x1x96xf32>
      %36 = vector.shape_cast %35 : vector<1x1x96xf32> to vector<1x96xf32>
      %37 = vector.broadcast %36 : vector<1x96xf32> to vector<16x96xf32>
      %38 = arith.addf %33, %37 : vector<16x96xf32>
      %39 = vector.extract_strided_slice %38 {offsets = [0, 0], sizes = [16, 32], strides = [1, 1]} : vector<16x96xf32> to vector<16x32xf32>
      %cst_21 = arith.constant 0.000000e+00 : f32
      %40 = vector.broadcast %cst_21 : f32 to vector<16x32xf32>
      %41 = arith.maximumf %39, %40 : vector<16x32xf32>
      %cst_22 = arith.constant 9.99999997E-7 : f32
      %42 = vector.broadcast %cst_22 : f32 to vector<16x32xf32>
      %43 = arith.addf %41, %42 : vector<16x32xf32>
      %44 = vector.extract_strided_slice %38 {offsets = [0, 32], sizes = [16, 32], strides = [1, 1]} : vector<16x96xf32> to vector<16x32xf32>
      %cst_23 = arith.constant 0.000000e+00 : f32
      %45 = vector.broadcast %cst_23 : f32 to vector<16x32xf32>
      %46 = arith.maximumf %44, %45 : vector<16x32xf32>
      %cst_24 = arith.constant 9.99999997E-7 : f32
      %47 = vector.broadcast %cst_24 : f32 to vector<16x32xf32>
      %48 = arith.addf %46, %47 : vector<16x32xf32>
      %49 = vector.extract_strided_slice %38 {offsets = [0, 64], sizes = [16, 32], strides = [1, 1]} : vector<16x96xf32> to vector<16x32xf32>
      %50 = vector.shape_cast %43 : vector<16x32xf32> to vector<8x2x32xf32>
      %51 = vector.shape_cast %48 : vector<16x32xf32> to vector<8x2x32xf32>
      %52 = vector.shape_cast %49 : vector<16x32xf32> to vector<8x2x32xf32>
      %cst_25 = arith.constant dense<0.000000e+00> : vector<8x2x2xf32>
      %53 = tpu.matmul %50, %51, %cst_25 {dimension_numbers = #tpu.dot_dimension_numbers<[2], [2], [1], [1], [0, 0, 0, 1, 1, 1], [0], [0]>} : vector<8x2x32xf32>, vector<8x2x32xf32>, vector<8x2x2xf32> -> vector<8x2x2xf32>
      %cst_26 = arith.constant dense<0.000000e+00> : vector<8x2xf32>
      %54 = vector.multi_reduction <add>, %53, %cst_26 [2] : vector<8x2x2xf32> to vector<8x2xf32>
      %55 = vector.shape_cast %54 : vector<8x2xf32> to vector<8x2x1xf32>
      %cst_27 = arith.constant 9.99999997E-7 : f32
      %56 = vector.broadcast %cst_27 : f32 to vector<8x2x1xf32>
      %57 = arith.addf %55, %56 : vector<8x2x1xf32>
      %58 = tpu.reciprocal %57 {approx = true} : vector<8x2x1xf32> -> vector<8x2x1xf32>
      %cst_28 = arith.constant dense<0.000000e+00> : vector<8x2x32xf32>
      %59 = tpu.matmul %53, %52, %cst_28 {dimension_numbers = #tpu.dot_dimension_numbers<[2], [1], [1], [2], [0, 0, 0, 1, 1, 2], [0], [0]>} : vector<8x2x2xf32>, vector<8x2x32xf32>, vector<8x2x32xf32> -> vector<8x2x32xf32>
      %60 = vector.broadcast %58 : vector<8x2x1xf32> to vector<8x2x32xf32>
      %61 = arith.mulf %59, %60 : vector<8x2x32xf32>
      %62 = vector.shape_cast %61 : vector<8x2x32xf32> to vector<16x32xf32>
      %63 = arith.addf %arg19, %62 : vector<16x32xf32>
      %64 = arith.index_cast %arg18 : i32 to index
      %c0_29 = arith.constant 0 : index
      %c0_30 = arith.constant 0 : index
      %65 = vector.load %arg10[%64, %c0_29, %c0_30] : memref<2x1x32xf32, #tpu.memory_space<vmem>>, vector<1x1x32xf32>
      %66 = vector.shape_cast %65 : vector<1x1x32xf32> to vector<1x32xf32>
      %67 = arith.index_cast %arg18 : i32 to index
      %c0_31 = arith.constant 0 : index
      %c0_32 = arith.constant 0 : index
      %68 = vector.load %arg11[%67, %c0_31, %c0_32] : memref<2x1x32xf32, #tpu.memory_space<vmem>>, vector<1x1x32xf32>
      %69 = vector.shape_cast %68 : vector<1x1x32xf32> to vector<1x32xf32>
      %cst_33 = arith.constant dense<0.000000e+00> : vector<16xf32>
      %70 = vector.multi_reduction <add>, %63, %cst_33 [1] : vector<16x32xf32> to vector<16xf32>
      %71 = vector.shape_cast %70 : vector<16xf32> to vector<16x1xf32>
      %cst_34 = arith.constant 3.200000e+01 : f32
      %72 = vector.broadcast %cst_34 : f32 to vector<16x1xf32>
      %73 = arith.divf %71, %72 : vector<16x1xf32>
      %74 = vector.broadcast %73 : vector<16x1xf32> to vector<16x32xf32>
      %75 = arith.subf %63, %74 : vector<16x32xf32>
      %76 = arith.mulf %75, %75 : vector<16x32xf32>
      %cst_35 = arith.constant dense<0.000000e+00> : vector<16xf32>
      %77 = vector.multi_reduction <add>, %76, %cst_35 [1] : vector<16x32xf32> to vector<16xf32>
      %78 = vector.shape_cast %77 : vector<16xf32> to vector<16x1xf32>
      %cst_36 = arith.constant 3.200000e+01 : f32
      %79 = vector.broadcast %cst_36 : f32 to vector<16x1xf32>
      %80 = arith.divf %78, %79 : vector<16x1xf32>
      %81 = vector.broadcast %73 : vector<16x1xf32> to vector<16x32xf32>
      %82 = arith.subf %63, %81 : vector<16x32xf32>
      %cst_37 = arith.constant 9.99999974E-6 : f32
      %83 = vector.broadcast %cst_37 : f32 to vector<16x1xf32>
      %84 = arith.addf %80, %83 : vector<16x1xf32>
      %85 = math.rsqrt %84 : vector<16x1xf32>
      %86 = vector.broadcast %85 : vector<16x1xf32> to vector<16x32xf32>
      %87 = arith.mulf %82, %86 : vector<16x32xf32>
      %88 = vector.broadcast %66 : vector<1x32xf32> to vector<16x32xf32>
      %89 = arith.mulf %87, %88 : vector<16x32xf32>
      %90 = vector.broadcast %69 : vector<1x32xf32> to vector<16x32xf32>
      %91 = arith.addf %89, %90 : vector<16x32xf32>
      %92 = arith.truncf %91 : vector<16x32xf32> to vector<16x32xbf16>
      %93 = arith.index_cast %arg18 : i32 to index
      %c0_38 = arith.constant 0 : index
      %c0_39 = arith.constant 0 : index
      %94 = vector.load %arg6[%93, %c0_38, %c0_39] : memref<2x32x64xbf16, #tpu.memory_space<vmem>>, vector<1x32x64xbf16>
      %95 = vector.shape_cast %94 : vector<1x32x64xbf16> to vector<32x64xbf16>
      %cst_40 = arith.constant dense<0.000000e+00> : vector<16x64xf32>
      %96 = tpu.matmul %92, %95, %cst_40 {dimension_numbers = #tpu.dot_dimension_numbers<[1], [0], [0], [1], [0, 0, 1, 1], [], []>} : vector<16x32xbf16>, vector<32x64xbf16>, vector<16x64xf32> -> vector<16x64xf32>
      %97 = arith.index_cast %arg18 : i32 to index
      %c0_41 = arith.constant 0 : index
      %c0_42 = arith.constant 0 : index
      %98 = vector.load %arg7[%97, %c0_41, %c0_42] : memref<2x1x64xf32, #tpu.memory_space<vmem>>, vector<1x1x64xf32>
      %99 = vector.shape_cast %98 : vector<1x1x64xf32> to vector<1x64xf32>
      %100 = vector.broadcast %99 : vector<1x64xf32> to vector<16x64xf32>
      %101 = arith.addf %96, %100 : vector<16x64xf32>
      %cst_43 = arith.constant 0.000000e+00 : f32
      %102 = vector.broadcast %cst_43 : f32 to vector<16x64xf32>
      %103 = arith.maximumf %101, %102 : vector<16x64xf32>
      %104 = arith.truncf %103 : vector<16x64xf32> to vector<16x64xbf16>
      %105 = arith.index_cast %arg18 : i32 to index
      %c0_44 = arith.constant 0 : index
      %c0_45 = arith.constant 0 : index
      %106 = vector.load %arg8[%105, %c0_44, %c0_45] : memref<2x64x32xbf16, #tpu.memory_space<vmem>>, vector<1x64x32xbf16>
      %107 = vector.shape_cast %106 : vector<1x64x32xbf16> to vector<64x32xbf16>
      %cst_46 = arith.constant dense<0.000000e+00> : vector<16x32xf32>
      %108 = tpu.matmul %104, %107, %cst_46 {dimension_numbers = #tpu.dot_dimension_numbers<[1], [0], [0], [1], [0, 0, 1, 1], [], []>} : vector<16x64xbf16>, vector<64x32xbf16>, vector<16x32xf32> -> vector<16x32xf32>
      %109 = arith.index_cast %arg18 : i32 to index
      %c0_47 = arith.constant 0 : index
      %c0_48 = arith.constant 0 : index
      %110 = vector.load %arg9[%109, %c0_47, %c0_48] : memref<2x1x32xf32, #tpu.memory_space<vmem>>, vector<1x1x32xf32>
      %111 = vector.shape_cast %110 : vector<1x1x32xf32> to vector<1x32xf32>
      %112 = vector.broadcast %111 : vector<1x32xf32> to vector<16x32xf32>
      %113 = arith.addf %108, %112 : vector<16x32xf32>
      %114 = arith.addf %91, %113 : vector<16x32xf32>
      %115 = arith.index_cast %arg18 : i32 to index
      %c0_49 = arith.constant 0 : index
      %c0_50 = arith.constant 0 : index
      %116 = vector.load %arg12[%115, %c0_49, %c0_50] : memref<2x1x32xf32, #tpu.memory_space<vmem>>, vector<1x1x32xf32>
      %117 = vector.shape_cast %116 : vector<1x1x32xf32> to vector<1x32xf32>
      %118 = arith.index_cast %arg18 : i32 to index
      %c0_51 = arith.constant 0 : index
      %c0_52 = arith.constant 0 : index
      %119 = vector.load %arg13[%118, %c0_51, %c0_52] : memref<2x1x32xf32, #tpu.memory_space<vmem>>, vector<1x1x32xf32>
      %120 = vector.shape_cast %119 : vector<1x1x32xf32> to vector<1x32xf32>
      %cst_53 = arith.constant dense<0.000000e+00> : vector<16xf32>
      %121 = vector.multi_reduction <add>, %114, %cst_53 [1] : vector<16x32xf32> to vector<16xf32>
      %122 = vector.shape_cast %121 : vector<16xf32> to vector<16x1xf32>
      %cst_54 = arith.constant 3.200000e+01 : f32
      %123 = vector.broadcast %cst_54 : f32 to vector<16x1xf32>
      %124 = arith.divf %122, %123 : vector<16x1xf32>
      %125 = vector.broadcast %124 : vector<16x1xf32> to vector<16x32xf32>
      %126 = arith.subf %114, %125 : vector<16x32xf32>
      %127 = arith.mulf %126, %126 : vector<16x32xf32>
      %cst_55 = arith.constant dense<0.000000e+00> : vector<16xf32>
      %128 = vector.multi_reduction <add>, %127, %cst_55 [1] : vector<16x32xf32> to vector<16xf32>
      %129 = vector.shape_cast %128 : vector<16xf32> to vector<16x1xf32>
      %cst_56 = arith.constant 3.200000e+01 : f32
      %130 = vector.broadcast %cst_56 : f32 to vector<16x1xf32>
      %131 = arith.divf %129, %130 : vector<16x1xf32>
      %132 = vector.broadcast %124 : vector<16x1xf32> to vector<16x32xf32>
      %133 = arith.subf %114, %132 : vector<16x32xf32>
      %cst_57 = arith.constant 9.99999974E-6 : f32
      %134 = vector.broadcast %cst_57 : f32 to vector<16x1xf32>
      %135 = arith.addf %131, %134 : vector<16x1xf32>
      %136 = math.rsqrt %135 : vector<16x1xf32>
      %137 = vector.broadcast %136 : vector<16x1xf32> to vector<16x32xf32>
      %138 = arith.mulf %133, %137 : vector<16x32xf32>
      %139 = vector.broadcast %117 : vector<1x32xf32> to vector<16x32xf32>
      %140 = arith.mulf %138, %139 : vector<16x32xf32>
      %141 = vector.broadcast %120 : vector<1x32xf32> to vector<16x32xf32>
      %142 = arith.addf %140, %141 : vector<16x32xf32>
      scf.yield %142 : vector<16x32xf32>
    }
    %c2_i32_8 = arith.constant 2 : i32
    %c0_9 = arith.constant 0 : index
    %c0_10 = arith.constant 0 : index
    %21 = vector.load %arg17[%c0_9, %c0_10] : memref<2x32xf32, #tpu.memory_space<vmem>>, vector<2x32xf32>
    %22 = vector.shape_cast %20 : vector<16x32xf32> to vector<8x2x32xf32>
    %cst_11 = arith.constant dense<0.000000e+00> : vector<2x32xf32>
    %23 = vector.multi_reduction <add>, %22, %cst_11 [0] : vector<8x2x32xf32> to vector<2x32xf32>
    %24 = arith.addf %21, %23 : vector<2x32xf32>
    %c0_12 = arith.constant 0 : index
    %c0_13 = arith.constant 0 : index
    %25 = vector.load %arg17[%c0_12, %c0_13] : memref<2x32xf32, #tpu.memory_space<vmem>>, vector<2x32xf32>
    tpu.vector_store %arg17[%c0_12, %c0_13], %24 {strides = array<i32>} : memref<2x32xf32, #tpu.memory_space<vmem>>, vector<2x32xf32>,
    %c1_i32_14 = arith.constant 1 : i32
    %26 = arith.cmpi eq, %arg0, %c1_i32_14 : i32
    %27 = arith.extui %26 : i1 to i32
    %c0_i32_15 = arith.constant 0 : i32
    %28 = arith.cmpi ne, %27, %c0_i32_15 : i32
    scf.if %28 {
      %c0_16 = arith.constant 0 : index
      %c0_17 = arith.constant 0 : index
      %29 = vector.load %arg17[%c0_16, %c0_17] : memref<2x32xf32, #tpu.memory_space<vmem>>, vector<2x32xf32>
      %cst_18 = arith.constant 6.250000e-02 : f32
      %30 = vector.broadcast %cst_18 : f32 to vector<2x32xf32>
      %31 = arith.mulf %29, %30 : vector<2x32xf32>
      %32 = arith.truncf %31 : vector<2x32xf32> to vector<2x32xbf16>
      %c0_19 = arith.constant 0 : index
      %c0_20 = arith.constant 0 : index
      %33 = vector.load %arg14[%c0_19, %c0_20] : memref<32x128xbf16, #tpu.memory_space<vmem>>, vector<32x128xbf16>
      %cst_21 = arith.constant dense<0.000000e+00> : vector<2x128xf32>
      %34 = tpu.matmul %32, %33, %cst_21 {dimension_numbers = #tpu.dot_dimension_numbers<[1], [0], [0], [1], [0, 0, 1, 1], [], []>} : vector<2x32xbf16>, vector<32x128xbf16>, vector<2x128xf32> -> vector<2x128xf32>
      %c0_22 = arith.constant 0 : index
      %c0_23 = arith.constant 0 : index
      %35 = vector.load %arg15[%c0_22, %c0_23] : memref<1x128xf32, #tpu.memory_space<vmem>>, vector<1x128xf32>
      %36 = vector.broadcast %35 : vector<1x128xf32> to vector<2x128xf32>
      %37 = arith.addf %34, %36 : vector<2x128xf32>
      %c0_24 = arith.constant 0 : index
      %c0_25 = arith.constant 0 : index
      %38 = vector.load %arg16[%c0_24, %c0_25] : memref<2x128xf32, #tpu.memory_space<vmem>>, vector<2x128xf32>
      tpu.vector_store %arg16[%c0_24, %c0_25], %37 {strides = array<i32>} : memref<2x128xf32, #tpu.memory_space<vmem>>, vector<2x128xf32>,
    } else {
    }
    return
  }
  func.func @transform_0(%arg0: i32) -> (i32, i32) {
    %c0_i32 = arith.constant 0 : i32
    %c0_i32_0 = arith.constant 0 : i32
    return %arg0, %c0_i32 : i32, i32
  }
  func.func @transform_1(%arg0: i32) -> (i32, i32) {
    %c0_i32 = arith.constant 0 : i32
    %c0_i32_0 = arith.constant 0 : i32
    %c0_i32_1 = arith.constant 0 : i32
    return %c0_i32, %c0_i32_0 : i32, i32
  }
  func.func @transform_2(%arg0: i32) -> (i32, i32) {
    %c0_i32 = arith.constant 0 : i32
    %c0_i32_0 = arith.constant 0 : i32
    return %arg0, %c0_i32 : i32, i32
  }
  func.func @transform_3(%arg0: i32) -> (i32, i32, i32) {
    %c0_i32 = arith.constant 0 : i32
    %c0_i32_0 = arith.constant 0 : i32
    %c0_i32_1 = arith.constant 0 : i32
    %c0_i32_2 = arith.constant 0 : i32
    return %c0_i32, %c0_i32_0, %c0_i32_1 : i32, i32, i32
  }
  func.func @transform_4(%arg0: i32) -> (i32, i32, i32) {
    %c0_i32 = arith.constant 0 : i32
    %c0_i32_0 = arith.constant 0 : i32
    %c0_i32_1 = arith.constant 0 : i32
    %c0_i32_2 = arith.constant 0 : i32
    return %c0_i32, %c0_i32_0, %c0_i32_1 : i32, i32, i32
  }
  func.func @transform_5(%arg0: i32) -> (i32, i32, i32) {
    %c0_i32 = arith.constant 0 : i32
    %c0_i32_0 = arith.constant 0 : i32
    %c0_i32_1 = arith.constant 0 : i32
    %c0_i32_2 = arith.constant 0 : i32
    return %c0_i32, %c0_i32_0, %c0_i32_1 : i32, i32, i32
  }
  func.func @transform_6(%arg0: i32) -> (i32, i32, i32) {
    %c0_i32 = arith.constant 0 : i32
    %c0_i32_0 = arith.constant 0 : i32
    %c0_i32_1 = arith.constant 0 : i32
    %c0_i32_2 = arith.constant 0 : i32
    return %c0_i32, %c0_i32_0, %c0_i32_1 : i32, i32, i32
  }
  func.func @transform_7(%arg0: i32) -> (i32, i32, i32) {
    %c0_i32 = arith.constant 0 : i32
    %c0_i32_0 = arith.constant 0 : i32
    %c0_i32_1 = arith.constant 0 : i32
    %c0_i32_2 = arith.constant 0 : i32
    return %c0_i32, %c0_i32_0, %c0_i32_1 : i32, i32, i32
  }
  func.func @transform_8(%arg0: i32) -> (i32, i32, i32) {
    %c0_i32 = arith.constant 0 : i32
    %c0_i32_0 = arith.constant 0 : i32
    %c0_i32_1 = arith.constant 0 : i32
    %c0_i32_2 = arith.constant 0 : i32
    return %c0_i32, %c0_i32_0, %c0_i32_1 : i32, i32, i32
  }
  func.func @transform_9(%arg0: i32) -> (i32, i32, i32) {
    %c0_i32 = arith.constant 0 : i32
    %c0_i32_0 = arith.constant 0 : i32
    %c0_i32_1 = arith.constant 0 : i32
    %c0_i32_2 = arith.constant 0 : i32
    return %c0_i32, %c0_i32_0, %c0_i32_1 : i32, i32, i32
  }
  func.func @transform_10(%arg0: i32) -> (i32, i32, i32) {
    %c0_i32 = arith.constant 0 : i32
    %c0_i32_0 = arith.constant 0 : i32
    %c0_i32_1 = arith.constant 0 : i32
    %c0_i32_2 = arith.constant 0 : i32
    return %c0_i32, %c0_i32_0, %c0_i32_1 : i32, i32, i32
  }
  func.func @transform_11(%arg0: i32) -> (i32, i32, i32) {
    %c0_i32 = arith.constant 0 : i32
    %c0_i32_0 = arith.constant 0 : i32
    %c0_i32_1 = arith.constant 0 : i32
    %c0_i32_2 = arith.constant 0 : i32
    return %c0_i32, %c0_i32_0, %c0_i32_1 : i32, i32, i32
  }
  func.func @transform_12(%arg0: i32) -> (i32, i32, i32) {
    %c0_i32 = arith.constant 0 : i32
    %c0_i32_0 = arith.constant 0 : i32
    %c0_i32_1 = arith.constant 0 : i32
    %c0_i32_2 = arith.constant 0 : i32
    return %c0_i32, %c0_i32_0, %c0_i32_1 : i32, i32, i32
  }
  func.func @transform_13(%arg0: i32) -> (i32, i32) {
    %c0_i32 = arith.constant 0 : i32
    %c0_i32_0 = arith.constant 0 : i32
    %c0_i32_1 = arith.constant 0 : i32
    return %c0_i32, %c0_i32_0 : i32, i32
  }
  func.func @transform_14(%arg0: i32) -> (i32, i32) {
    %c0_i32 = arith.constant 0 : i32
    %c0_i32_0 = arith.constant 0 : i32
    %c0_i32_1 = arith.constant 0 : i32
    return %c0_i32, %c0_i32_0 : i32, i32
  }
  func.func @transform_15(%arg0: i32) -> (i32, i32) {
    %c0_i32 = arith.constant 0 : i32
    %c0_i32_0 = arith.constant 0 : i32
    %c0_i32_1 = arith.constant 0 : i32
    return %c0_i32, %c0_i32_0 : i32, i32
  }
}

</mosaic_0001>

<bundles_post_ra>
// kernel: model_forward.1
= control target key start
LH: loop header
LB: loop body
LE: loop exit
PB: predicated region body
PF: predicated region fallthrough
CT: control target
= control target key end

     0   :  { %20 = vsyncpa [#allocation4], 0  ;;  %s4085_s18 = smov 0   ;;  %s4610_s0 = inlined_call_operand.vmem [shape: s32[32,1], index: 0, kind: input, shape index: {}]   ;;  %s4611_s1 = inlined_call_operand.vmem [shape: f32[16,32], index: 1, kind: input, shape index: {}]   ;;  %s4612_s2 = inlined_call_operand.vmem [shape: f32[16,32], index: 2, kind: input, shape index: {}]   ;;  %s4613_s3 = inlined_call_operand.vmem [shape: bf16[2,32,96], index: 3, kind: input, shape index: {}]   ;;  %s4614_s4 = inlined_call_operand.vmem [shape: f32[2,1,96], index: 4, kind: input, shape index: {}]   ;;  %s4615_s5 = inlined_call_operand.vmem [shape: bf16[2,32,64], index: 5, kind: input, shape index: {}]   ;;  %s4616_s6 = inlined_call_operand.vmem [shape: f32[2,1,64], index: 6, kind: input, shape index: {}]   ;;  %s4617_s7 = inlined_call_operand.vmem [shape: bf16[2,64,32], index: 7, kind: input, shape index: {}]   ;;  %s4618_s8 = inlined_call_operand.vmem [shape: f32[2,1,32], index: 8, kind: input, shape index: {}]   ;;  %s4619_s9 = inlined_call_operand.vmem [shape: f32[2,1,32], index: 9, kind: input, shape index: {}]   ;;  %s4620_s10 = inlined_call_operand.vmem [shape: f32[2,1,32], index: 10, kind: input, shape index: {}]   ;;  %s4621_s11 = inlined_call_operand.vmem [shape: f32[2,1,32], index: 11, kind: input, shape index: {}]   ;;  %s4622_s12 = inlined_call_operand.vmem [shape: f32[2,1,32], index: 12, kind: input, shape index: {}]   ;;  %s4623_s13 = inlined_call_operand.vmem [shape: bf16[32,128], index: 13, kind: input, shape index: {}]   ;;  %s4624_s14 = inlined_call_operand.vmem [shape: f32[1,128], index: 14, kind: input, shape index: {}]   ;;  %s4625_s15 = inlined_call_operand.hbm [shape: f32[2,128], index: 15, kind: output, shape index: {}]  }
   0x1 LB: > { %s4091_s19 = sadd.s32 4294967295, %s3951_s18   ;;  %p3488_p0 = scmp.ge.s32.totalorder %s3951_s18, 1  ;;  %s3951_s18 = sphi %s4085_s18, %s26_s18  }
   0x2   : > { %p443_p1 = scmp.lt.s32.totalorder %s3951_s18, 3 }
   0x4   : > { %p444_p2 = pnand %p3488_p0, %p443_p1 }
   0x5   : > { %s3489_s20 = sshll.u32 (!%p444_p2), %s4091_s19, 1  ;;  %p496_p3 = scmp.lt.s32.totalorder (!%p444_p2), %s4091_s19, 1 }
   0x6   : > { %447 = sbr.rel (%p444_p2) target bundleno = 2557 (0x9fd), region = 80  ;;  %p491_p4 = scmp.lt.s32.totalorder (!%p444_p2), %s3489_s20, 3 }
   0x7   : > { %p3492_p5 = scmp.ne.s32.totalorder (!%p444_p2), %s4091_s19, 0 }
   0xd   : > { %s497_s21 = scalar_select %p496_p3, %s4091_s19, 1 }
   0xe   : > { %s4635_s20 = smov (!%p491_p4, %s3489_s20), 3  ;;  %504 = sbr.rel (%p3492_p5) target bundleno = 21 (0x15), region = 84 }
   0xf   : > { %s3491_s22 = sshll.u32 %s497_s21, 3  ;;  %s3490_s23 = sshll.u32 %s4635_s20, 3  ;;  %vm505_vm0 = vcmask (!%p3492_p5), 254976   ;;  %v3989_v0 = vmov (!%p3492_p5), 0.0  }
  0x10   : > { %s4101_s26 = scalar_lea.vmem %s4612_s2, %s3491_s22  ;;  %s494_s29 = scalar_lea.vmem %s4610_s0, %s3490_s23  ;;  %506 = vst.msk [vmem:[#allocation2] sm:$0x3] (!%p3492_p5), %vm505_vm0, %v3989_v0 }
  0x15 PF: > { %v507_v1 = vld [vmem:[%s494_s29] sm:$0xff]  ;;  %v3990_v2 = vmov 0   ;;  %v524_v4 = vld [vmem:[%s4611_s1 + $0x8] sm:$0xff]  ;;  %v509_v7 = vlaneseq  ;;  %vm525_vm1 = vcmask 130048   ;;  %v3991_v10 = vmov 0.0   ;;  %s4141_s21 = smov 0  }
  0x16   : > { %3843 = vset.pattern.permute.xlu0 %v3990_v2  ;;  %v523_v3 = vld [vmem:[%s4611_s1] sm:$0xff]  ;;  %v508_v6 = vld [vmem:[%s494_s29 + $0x8] sm:$0xff]  ;;  %v3992_v14 = vmov 1966171168   ;;  %v3993_v23 = vmov 1983009808  }
  0x17   : > { %512 = vperm.xlu0 %3843, %v507_v1   ;;  %v3737_v5 = vpack.c.bf16 %v524_v4, %v523_v3  ;;  %v510_v8 = vand.u32 127, %v509_v7  ;;  %v663_v15 = vunpack.c.l.s4 %v3992_v14  ;;  %v4113_v16 = vshrl.u32 %v509_v7, 7  ;;  %v659_v18 = vld [vmem:[%s4101_s26] sm:$0xff] }
  0x18   : > { %v661_v20 = vcombine.high %v659_v18, %v659_v18  ;;  %v611_v24 = vunpack.c.l.s4 %v3993_v23 }
  0x19   : > { %3738 = vmatprep.subr.bf16.mxu0 %v3737_v5  ;;  %v664_v17 = vunpack.c.0.s8 %v663_v15  ;;  %v712_v31 = vsub.s32 0, %v4113_v16 }
  0x1a   : > { %3740 = vmatpush3.bf16.msra.mxu0 %v3737_v5  ;;  %v612_v27 = vunpack.c.0.s8 %v611_v24 }
  0x1b   : > { %515 = vperm.xlu0 %3843, %v508_v6   ;;  %v667_v19 = vsub.s32 %v664_v17, %v4113_v16 }
  0x1c   : > { %v4119_v33 = vsub.s32 %v612_v27, %v4113_v16 }
  0x1d   : > { %v675_v21 = vrot.slane %v661_v20, %v667_v19  ;;  %v668_v22 = vrot.slane %v659_v18, %v667_v19 }
  0x1f   : > { %v677_v25 = vcombine.high %v675_v21, %v675_v21  ;;  %v676_v26 = vcombine.high %v668_v22, %v668_v22  ;;  %v691_v28 = vrot.slane %v675_v21, %v667_v19  ;;  %v684_v29 = vrot.slane %v668_v22, %v667_v19 }
  0x21   : > { %v705_v30 = vrot.slane %v677_v25, %v667_v19  ;;  %v698_v32 = vrot.slane %v676_v26, %v667_v19  ;;  %v707_v34 = vcombine.high %v691_v28, %v691_v28  ;;  %v706_v35 = vcombine.high %v684_v29, %v684_v29 }
  0x22   : > { %v729_v38 = vrot.slane %v691_v28, %v712_v31  ;;  %v713_v40 = vrot.slane %v684_v29, %v712_v31 }
  0x23   : > { %v709_v36 = vcombine.high %v705_v30, %v705_v30  ;;  %v708_v39 = vcombine.high %v698_v32, %v698_v32  ;;  %v733_v43 = vrot.slane %v705_v30, %v712_v31  ;;  %v737_v44 = vrot.slane %v707_v34, %v712_v31 }
  0x24   : > { %v717_v48 = vrot.slane %v698_v32, %v712_v31  ;;  %v721_v49 = vrot.slane %v706_v35, %v712_v31 }
  0x25   : > { %v741_v53 = vrot.slane %v709_v36, %v712_v31  ;;  %v725_v57 = vrot.slane %v708_v39, %v712_v31 }
  0x96   : > { %v513_v9 = vpop.permute.xlu0 %512 }
  0x97   : > { %vm517_vm2 = vcmp.eq.s32.totalorder %v513_v9, %v510_v8 }
  0x98   : > { %v3493_v11 = vsel %vm517_vm2, 1.0, %v3991_v10 }
  0x99   : > { %3618 = vmatprep.mubr.msk.f32.mxu0 %vm525_vm1, %v3493_v11 }
  0x9a   : > { %v516_v12 = vpop.permute.xlu0 %515 }
  0x9b   : > { %vm518_vm3 = vcmp.eq.s32.totalorder %v516_v12, %v510_v8 }
  0x9c   : > { %v3494_v13 = vsel %vm518_vm3, 1.0, %v3991_v10 }
  0x9d   : > { %3619 = vmatmul.mubr.msk.f32.vlgmr.msra.gmra.mrb[0].mxu0 %vm525_vm1, %v3494_v13 }
 0x170   : > { %v3620_v37 = vpop.f32.mrb[0].mxu0 }
 0x171   : > { %v626_v41 = vcombine.high %v3620_v37, %v3620_v37  ;;  %v633_v42 = vrot.slane %v3620_v37, %v4119_v33  ;;  %v598_v45 = vpop.f32.mrb[1].mxu0 }
 0x172   : > { %v609_v46 = vcombine.high %v598_v45, %v598_v45  ;;  %v616_v47 = vrot.slane %v598_v45, %v4119_v33 }
 0x173   : > { %v640_v50 = vrot.slane %v626_v41, %v4119_v33  ;;  %v641_v51 = vcombine.high %v633_v42, %v633_v42  ;;  %v655_v52 = vmul.f32 5.656854, %v633_v42 }
 0x174   : > { %v623_v54 = vrot.slane %v609_v46, %v4119_v33  ;;  %v624_v55 = vcombine.high %v616_v47, %v616_v47  ;;  %v651_v56 = vmul.f32 5.656854, %v616_v47 }
 0x175   : > { %v642_v58 = vcombine.high %v640_v50, %v640_v50  ;;  %v656_v59 = vmul.f32 5.656854, %v641_v51  ;;  %v657_v60 = vmul.f32 5.656854, %v640_v50  ;;  %v754_v61 = vadd.f32 %v729_v38, %v655_v52  }
 0x176   : > { %v625_v62 = vcombine.high %v623_v54, %v623_v54  ;;  %v652_v63 = vmul.f32 5.656854, %v624_v55  ;;  %v653_v0 = vmul.f32 5.656854, %v623_v54  ;;  %v750_v1 = vadd.f32 %v713_v40, %v651_v56  }
 0x177   : > { %v658_v2 = vmul.f32 5.656854, %v642_v58  ;;  %v755_v3 = vadd.f32 %v733_v43, %v656_v59   ;;  %v756_v4 = vadd.f32 %v737_v44, %v657_v60  }
 0x178   : > { %v654_v5 = vmul.f32 5.656854, %v625_v62  ;;  %v751_v6 = vadd.f32 %v717_v48, %v652_v63   ;;  %v752_v7 = vadd.f32 %v721_v49, %v653_v0  }
 0x179   : > { %v757_v8 = vadd.f32 %v741_v53, %v658_v2  }
 0x17a   : > { %v753_v9 = vadd.f32 %v725_v57, %v654_v5  }
 0x17b LB: >> { %v3994_v10 = vmov 0.0   ;;  %vm3995_vm4 = vmmov 0   ;;  %s3561_s22 = sshll.u32 %s3987_s21, 4  ;;  %v780_v12 = vcombine.low %v3983_v1, %v3979_v6  ;;  %v781_v13 = vcombine.low %v3975_v7, %v3971_v9  ;;  %s824_s16 = scalar_lea.vmem %s4614_s4, %s3987_s21  ;;  %s3987_s21 = sphi %s4141_s21, %s763_s21   ;;  %v3983_v1 = vphi %v750_v1, %v4633_v1   ;;  %v3979_v6 = vphi %v751_v6, %v4632_v6   ;;  %v3975_v7 = vphi %v752_v7, %v4631_v7   ;;  %v3971_v9 = vphi %v753_v9, %v4630_v9   ;;  %v3967_v61 = vphi %v754_v61, %v4629_v61   ;;  %v3963_v3 = vphi %v755_v3, %v4628_v3   ;;  %v3959_v4 = vphi %v756_v4, %v4627_v4   ;;  %v3955_v8 = vphi %v757_v8, %v4626_v8  }
 0x17c   : >> { %3621 = vmatprep.subr.bf16.mxu0 %v3994_v10  ;;  %3625 = vmatprep.mubr.msk.bf16.mxu0 %vm3995_vm4, %v3994_v10  ;;  %s819_s25 = scalar_lea.vmem %s4613_s3, %s3561_s22  ;;  %s4183_s28 = scalar_lea.vmem %s4615_s5, %s3561_s22  ;;  %v797_v14 = vcombine.low %v3967_v61, %v3963_v3  ;;  %v798_v15 = vcombine.low %v3959_v4, %v3955_v8  ;;  %vm844_vm5 = vcmask 261120   ;;  %v3499_v25 = vld [vmem:[%s824_s16] ss:$0 sm:$0xff]  ;;  %vm1683_vm6 = vcmask 1041408  }
 0x17d   : >> { %3629 = vmatprep.subr.mxu1 %v3994_v10  ;;  %3631 = vmatprep.mubr.msk.f32.mxu1 %vm3995_vm4, %v3994_v10  ;;  %v3845_v11 = vld [vmem:[%s819_s25] sm:$0xff]   ;;  %v3846_v17 = vld [vmem:[%s819_s25 + $0x8] sm:$0xff]   ;;  %v788_v18 = vrot.slane %v780_v12, %v4119_v33  ;;  %v795_v19 = vrot.slane %v781_v13, %v4119_v33  ;;  %s3996_s17 = smov 96   ;;  %s3997_s20 = smov 64   ;;  %vm1679_vm7 = vcmask 15360   ;;  %vm1629_vm8 = vcmask 9216  }
 0x17e   : >> { %3622 = vmatpush3.bf16.msra.mxu0 %v3845_v11  ;;  %v805_v20 = vrot.slane %v797_v14, %v4119_v33  ;;  %v812_v21 = vrot.slane %v798_v15, %v4119_v33  ;;  %s3563_s22 = sshll.u32 %s3987_s21, 5  ;;  %s2362_s16 = scalar_lea.vmem %s4620_s10, %s3987_s21  ;;  %vm2858_vm9 = vcmask 523264  }
 0x17f   : >> { %3623 = vmatprep.subr.bf16.mxu0 %v3994_v10  ;;  %v796_v22 = vcombine.low %v788_v18, %v795_v19  ;;  %s4435_s25 = scalar_lea.vmem %s4617_s7, %s3563_s22  ;;  %s2748_s22 = scalar_lea.vmem %s4616_s6, %s3987_s21 }
 0x180   : >> { %v813_v23 = vcombine.low %v805_v20, %v812_v21 }
 0x182   : >> { %3624 = vmatpush3.bf16.msra.mxu0 %v3846_v17  ;;  %v816_v24 = vpack.c.bf16 %v813_v23, %v796_v22 }
 0x183   : >> { %3654 = vmatprep.subr.mxu0 %v3994_v10 }
 0x185   : >> { %3626 = vmatmul.mubr.msk.bf16.vlgmr.msra.gmra.mrb[0].mxu0 %vm844_vm5, %v816_v24 }
 0x186   : >> { %3656 = vmatprep.mubr.msk.f32.mxu0 %vm3995_vm4, %v3994_v10 }
 0x258   : >> { %v882_v26 = vpop.f32.mrb[0].mxu0 }
 0x259   : >> { %v883_v27 = vadd.f32 %v3499_v25, %v882_v26  ;;  %v3627_v28 = vpop.f32.mrb[1].mxu0 }
 0x25a   : >> { %v885_v29 = vpop.f32.mrb[2].mxu0 }
 0x25b   : >> { %v889_v30 = vmax.f32 %v883_v27, 0.0  ;;  %v886_v31 = vadd.f32 %v3499_v25, %v885_v29  ;;  %v3628_v32 = vpop.f32.mrb[3].mxu0  ;;  %v931_v51 = vcombine.high %v883_v27, %v883_v27  ;;  %v938_v52 = vrot.slane %v883_v27, %v4119_v33 }
 0x25d   : >> { %v891_v34 = vadd.f32 1e-06, %v889_v30  ;;  %v890_v35 = vmax.f32 %v886_v31, 0.0  ;;  %v945_v56 = vrot.slane %v931_v51, %v4119_v33  ;;  %v946_v58 = vcombine.high %v938_v52, %v938_v52 }
 0x25e   : >> { %v1676_v59 = vrot.slane %v938_v52, %v4119_v33  ;;  %v948_v60 = vcombine.high %v886_v31, %v886_v31  ;;  %v955_v62 = vrot.slane %v886_v31, %v4119_v33 }
 0x25f   : >> { %v892_v36 = vadd.f32 1e-06, %v890_v35  ;;  %v902_v37 = vrot.slane %v891_v34, %v4119_v33  ;;  %v895_v38 = vcombine.high %v891_v34, %v891_v34  ;;  %v1762_v63 = vrot.slane %v946_v58, %v4119_v33 }
 0x260   : >> { %v947_v0 = vcombine.high %v945_v56, %v945_v56  ;;  %v1846_v2 = vrot.slane %v945_v56, %v4119_v33  ;;  %v962_v5 = vrot.slane %v948_v60, %v4119_v33  ;;  %v963_v12 = vcombine.high %v955_v62, %v955_v62 }
 0x261   : >> { %v971_v39 = vrot.slane %v902_v37, %v4119_v33  ;;  %v4209_v40 = vrot.slane %v895_v38, %v4119_v33  ;;  %v910_v41 = vcombine.high %v902_v37, %v902_v37  ;;  %v912_v42 = vcombine.high %v892_v36, %v892_v36 }
 0x262   : >> { %v4212_v43 = vrot.slane %v892_v36, %v4119_v33  ;;  %v1930_v11 = vrot.slane %v947_v0, %v4119_v33  ;;  %v2014_v13 = vrot.slane %v955_v62, %v4119_v33  ;;  %v2098_v14 = vrot.slane %v963_v12, %v4119_v33 }
 0x263   : >> { %972 = vrot.lane.b32.xlu0 %v971_v39, %s3996_s17  ;;  %v1137_v44 = vrot.slane %v4209_v40, %v4119_v33  ;;  %v4218_v45 = vcombine.high %v4209_v40, %v4209_v40  ;;  %v1054_v46 = vrot.slane %v910_v41, %v4119_v33  ;;  %v4222_v47 = vrot.slane %v912_v42, %v4119_v33 }
 0x264   : >> { %v927_v49 = vcombine.high %v4212_v43, %v4212_v43  ;;  %v1303_v50 = vrot.slane %v4212_v43, %v4119_v33  ;;  %v964_v15 = vcombine.high %v962_v5, %v962_v5  ;;  %v2182_v17 = vrot.slane %v962_v5, %v4119_v33 }
 0x265   : >> { %1138 = vrot.lane.b32.xlu1 %v1137_v44, %s3996_s17  ;;  %v1220_v48 = vrot.slane %v4218_v45, %v4119_v33  ;;  %v4234_v54 = vcombine.high %v4222_v47, %v4222_v47  ;;  %v1469_v55 = vrot.slane %v4222_v47, %v4119_v33 }
 0x266   : >> { %v1386_v53 = vrot.slane %v927_v49, %v4119_v33  ;;  %v2266_v18 = vrot.slane %v964_v15, %v4119_v33 }
 0x267   : >> { %1055 = vrot.lane.b32.xlu0 %v1054_v46, %s3996_s17  ;;  %v1552_v57 = vrot.slane %v4234_v54, %v4119_v33 }
 0x269   : >> { %1221 = vrot.lane.b32.xlu1 %v1220_v48, %s3996_s17 }
 0x26b   : >> { %1304 = vrot.lane.b32.xlu0 %v1303_v50, %s3996_s17 }
 0x26d   : >> { %1387 = vrot.lane.b32.xlu1 %v1386_v53, %s3996_s17 }
 0x26f   : >> { %1470 = vrot.lane.b32.xlu0 %v1469_v55, %s3996_s17 }
 0x271   : >> { %1553 = vrot.lane.b32.xlu1 %v1552_v57, %s3996_s17 }
 0x273   : >> { %1677 = vrot.lane.b32.xlu0 %v1676_v59, %s3997_s20 }
 0x275   : >> { %1763 = vrot.lane.b32.xlu1 %v1762_v63, %s3997_s20 }
 0x277   : >> { %1847 = vrot.lane.b32.xlu0 %v1846_v2, %s3997_s20 }
 0x279   : >> { %1931 = vrot.lane.b32.xlu1 %v1930_v11, %s3997_s20 }
 0x27b   : >> { %2015 = vrot.lane.b32.xlu0 %v2014_v13, %s3997_s20 }
 0x27d   : >> { %2099 = vrot.lane.b32.xlu1 %v2098_v14, %s3997_s20 }
 0x27f   : >> { %2183 = vrot.lane.b32.xlu0 %v2182_v17, %s3997_s20 }
 0x281   : >> { %2267 = vrot.lane.b32.xlu1 %v2266_v18, %s3997_s20 }
 0x2d5   : >> { %v973_v19 = vpop.permute.xlu0 %972 }
 0x2d6   : >> { %3630 = vmatpush3.xpose.msk.msra.mxu1 %vm844_vm5, %v973_v19 }
 0x2d7   : >> { %v1139_v20 = vpop.permute.xlu1 %1138  ;;  %3634 = vmatprep.subr.mxu1 %v3994_v10 }
 0x2d9   : >> { %3632 = vmatmul.mubr.msk.f32.vlgmr.msra.gmra.mrb[0].mxu1 %vm844_vm5, %v902_v37  ;;  %v1056_v21 = vpop.permute.xlu0 %1055 }
 0x2da   : >> { %3635 = vmatpush3.xpose.msk.msra.mxu1 %vm844_vm5, %v1056_v21  ;;  %3636 = vmatprep.mubr.msk.f32.mxu1 %vm3995_vm4, %v3994_v10 }
 0x2db   : >> { %v1222_v22 = vpop.permute.xlu1 %1221  ;;  %3639 = vmatprep.subr.mxu1 %v3994_v10 }
 0x2dd   : >> { %3637 = vmatmul.mubr.msk.f32.vlgmr.msra.gmra.mrb[2].mxu1 %vm844_vm5, %v910_v41  ;;  %v1305_v24 = vpop.permute.xlu0 %1304 }
 0x2de   : >> { %3640 = vmatpush3.xpose.msk.msra.mxu1 %vm844_vm5, %v1139_v20  ;;  %3641 = vmatprep.mubr.msk.f32.mxu1 %vm3995_vm4, %v3994_v10 }
 0x2df   : >> { %v1388_v23 = vpop.permute.xlu1 %1387  ;;  %3644 = vmatprep.subr.mxu1 %v3994_v10 }
 0x2e0   : >> { %3655 = vmatpush3.xpose.msk.msra.mxu0 %vm844_vm5, %v1388_v23 }
 0x2e1   : >> { %3642 = vmatmul.mubr.msk.f32.vlgmr.msra.gmra.mrb[4].mxu1 %vm844_vm5, %v4209_v40  ;;  %3664 = vmatprep.subr.mxu0 %v3994_v10  ;;  %v1471_v26 = vpop.permute.xlu0 %1470 }
 0x2e2   : >> { %3645 = vmatpush3.xpose.msk.msra.mxu1 %vm844_vm5, %v1222_v22  ;;  %3646 = vmatprep.mubr.msk.f32.mxu1 %vm3995_vm4, %v3994_v10 }
 0x2e3   : >> { %3657 = vmatmul.mubr.msk.f32.vlgmr.msra.gmra.mrb[4].mxu0 %vm844_vm5, %v927_v49  ;;  %v1554_v25 = vpop.permute.xlu1 %1553  ;;  %3649 = vmatprep.subr.mxu1 %v3994_v10 }
 0x2e4   : >> { %3665 = vmatpush3.xpose.msk.msra.mxu0 %vm844_vm5, %v1554_v25  ;;  %3666 = vmatprep.mubr.msk.f32.mxu0 %vm3995_vm4, %v3994_v10 }
 0x2e5   : >> { %3647 = vmatmul.mubr.msk.f32.vlgmr.msra.gmra.mrb[6].mxu1 %vm844_vm5, %v4218_v45  ;;  %3674 = vmatprep.subr.mxu0 %v3994_v10  ;;  %v1678_v28 = vpop.permute.xlu0 %1677 }
 0x2e6   : >> { %3650 = vmatpush3.xpose.msk.msra.mxu1 %vm844_vm5, %v1305_v24  ;;  %3651 = vmatprep.mubr.msk.f32.mxu1 %vm3995_vm4, %v3994_v10 }
 0x2e7   : >> { %3667 = vmatmul.mubr.msk.f32.vlgmr.msra.gmra.mrb[6].mxu0 %vm844_vm5, %v4234_v54  ;;  %v1764_v27 = vpop.permute.xlu1 %1763  ;;  %3659 = vmatprep.subr.mxu1 %v3994_v10 }
 0x2e8   : >> { %3675 = vmatpush3.msk.msra.mxu0 %vm1683_vm6, %v1764_v27  ;;  %3676 = vmatprep.mubr.msk.f32.mxu0 %vm3995_vm4, %v3994_v10 }
 0x2e9   : >> { %3652 = vmatmul.mubr.msk.f32.vlgmr.msra.gmra.mrb[8].mxu1 %vm844_vm5, %v4212_v43  ;;  %3684 = vmatprep.subr.mxu0 %v3994_v10  ;;  %v1848_v30 = vpop.permute.xlu0 %1847 }
 0x2ea   : >> { %3660 = vmatpush3.xpose.msk.msra.mxu1 %vm844_vm5, %v1471_v26  ;;  %3661 = vmatprep.mubr.msk.f32.mxu1 %vm3995_vm4, %v3994_v10 }
 0x2eb   : >> { %3669 = vmatprep.subr.mxu1 %v3994_v10  ;;  %v1932_v35 = vpop.permute.xlu1 %1931 }
 0x2ed   : >> { %3662 = vmatmul.mubr.msk.f32.vlgmr.msra.gmra.mrb[10].mxu1 %vm844_vm5, %v4222_v47  ;;  %v2016_v39 = vpop.permute.xlu0 %2015 }
 0x2ee   : >> { %3670 = vmatpush3.msk.msra.mxu1 %vm1683_vm6, %v1678_v28  ;;  %3671 = vmatprep.mubr.msk.f32.mxu1 %vm3995_vm4, %v3994_v10 }
 0x2ef   : >> { %3679 = vmatprep.subr.mxu1 %v3994_v10  ;;  %v2100_v42 = vpop.permute.xlu1 %2099 }
 0x2f1   : >> { %v2184_v50 = vpop.permute.xlu0 %2183 }
 0x2f3   : >> { %v2268_v52 = vpop.permute.xlu1 %2267 }
 0x3ac   : >> { %v1044_v29 = vpop.f32.mrb[0].mxu1 }
 0x3ad   : >> { %v3633_v31 = vpop.f32.mrb[1].mxu1  ;;  %3672 = vmatmul.mubr.msk.f32.vlgmr.msra.gmra.mrb[12].mxu1 %vm1679_vm7, %v1044_v29  ;;  %v1630_v32 = vsel %vm1629_vm8, %v1044_v29, 0.0 }
 0x3ae   : >> { %3680 = vmatpush3.msk.msra.mxu1 %vm1683_vm6, %v1848_v30  ;;  %1631 = vadd.xlane.f32.xlu0 %v1630_v32 }
 0x3af   : >> { %3681 = vmatprep.mubr.msk.f32.mxu1 %vm3995_vm4, %v3994_v10  ;;  %3689 = vmatprep.subr.mxu1 %v3994_v10 }
 0x3b0   : >> { %v1127_v34 = vpop.f32.mrb[2].mxu1 }
 0x3b1   : >> { %v3638_v36 = vpop.f32.mrb[3].mxu1  ;;  %3677 = vmatmul.mubr.msk.f32.vlgmr.msra.gmra.mrb[8].mxu0 %vm1679_vm7, %v1127_v34  ;;  %v1633_v37 = vsel %vm1629_vm8, %v1127_v34, 0.0 }
 0x3b2   : >> { %3685 = vmatpush3.msk.msra.mxu0 %vm1683_vm6, %v1932_v35  ;;  %1634 = vadd.xlane.f32.xlu1 %v1633_v37 }
 0x3b3   : >> { %3686 = vmatprep.mubr.msk.f32.mxu0 %vm3995_vm4, %v3994_v10  ;;  %3694 = vmatprep.subr.mxu0 %v3994_v10 }
 0x3b4   : >> { %v1210_v38 = vpop.f32.mrb[4].mxu1 }
 0x3b5   : >> { %v3643_v40 = vpop.f32.mrb[5].mxu1  ;;  %3682 = vmatmul.mubr.msk.f32.vlgmr.msra.gmra.mrb[14].mxu1 %vm1679_vm7, %v1210_v38  ;;  %v1636_v49 = vsel %vm1629_vm8, %v1210_v38, 0.0 }
 0x3b6   : >> { %3690 = vmatpush3.msk.msra.mxu1 %vm1683_vm6, %v2016_v39  ;;  %v1459_v41 = vpop.f32.mrb[4].mxu0  ;;  %3691 = vmatprep.mubr.msk.f32.mxu1 %vm3995_vm4, %v3994_v10 }
 0x3b7   : >> { %v3658_v43 = vpop.f32.mrb[5].mxu0  ;;  %v1645_v44 = vsel %vm1629_vm8, %v1459_v41, 0.0  ;;  %3699 = vmatprep.subr.mxu1 %v3994_v10 }
 0x3b8   : >> { %v1293_v45 = vpop.f32.mrb[6].mxu1  ;;  %1646 = vadd.xlane.f32.xlu0 %v1645_v44 }
 0x3b9   : >> { %v3648_v46 = vpop.f32.mrb[7].mxu1  ;;  %3687 = vmatmul.mubr.msk.f32.vlgmr.msra.gmra.mrb[10].mxu0 %vm1679_vm7, %v1293_v45  ;;  %v1639_v55 = vsel %vm1629_vm8, %v1293_v45, 0.0 }
 0x3ba   : >> { %3695 = vmatpush3.msk.msra.mxu0 %vm1683_vm6, %v2100_v42  ;;  %v1625_v47 = vpop.f32.mrb[6].mxu0  ;;  %3696 = vmatprep.mubr.msk.f32.mxu0 %vm3995_vm4, %v3994_v10 }
 0x3bb   : >> { %v3668_v48 = vpop.f32.mrb[7].mxu0  ;;  %3704 = vmatprep.subr.mxu0 %v3994_v10  ;;  %v1651_v59 = vsel %vm1629_vm8, %v1625_v47, 0.0 }
 0x3bc   : >> { %v1376_v51 = vpop.f32.mrb[8].mxu1  ;;  %1637 = vadd.xlane.f32.xlu0 %v1636_v49 }
 0x3bd   : >> { %v3653_v53 = vpop.f32.mrb[9].mxu1  ;;  %3692 = vmatmul.mubr.msk.f32.vlgmr.msra.gmra.mrb[16].mxu1 %vm1679_vm7, %v1376_v51  ;;  %3697 = vmatmul.mubr.msk.f32.vlgmr.msra.gmra.mrb[12].mxu0 %vm1679_vm7, %v1459_v41  ;;  %v1642_v54 = vsel %vm1629_vm8, %v1376_v51, 0.0 }
 0x3be   : >> { %3700 = vmatpush3.msk.msra.mxu1 %vm1683_vm6, %v2184_v50  ;;  %3705 = vmatpush3.msk.msra.mxu0 %vm1683_vm6, %v2268_v52 }
 0x3bf   : >> { %1643 = vadd.xlane.f32.xlu1 %v1642_v54  ;;  %3701 = vmatprep.mubr.msk.f32.mxu1 %vm3995_vm4, %v3994_v10 }
 0x3c0   : >> { %v1542_v56 = vpop.f32.mrb[10].mxu1  ;;  %3706 = vmatprep.mubr.msk.f32.mxu0 %vm3995_vm4, %v3994_v10  ;;  %1640 = vadd.xlane.f32.xlu0 %v1639_v55 }
 0x3c1   : >> { %v3663_v57 = vpop.f32.mrb[11].mxu1  ;;  %3702 = vmatmul.mubr.msk.f32.vlgmr.msra.gmra.mrb[18].mxu1 %vm1679_vm7, %v1542_v56  ;;  %3707 = vmatmul.mubr.msk.f32.vlgmr.msra.gmra.mrb[14].mxu0 %vm1679_vm7, %v1625_v47  ;;  %v1648_v58 = vsel %vm1629_vm8, %v1542_v56, 0.0 }
 0x3c2   : >> { %3709 = vmatprep.subr.bf16.mxu1 %v3994_v10  ;;  %3713 = vmatprep.mubr.msk.bf16.mxu1 %vm3995_vm4, %v3994_v10 }
 0x3c3   : >> { %1649 = vadd.xlane.f32.xlu1 %v1648_v58  ;;  %3717 = vmatprep.subr.bf16.mxu0 %v3994_v10 }
 0x3c4   : >> { %1652 = vadd.xlane.f32.xlu0 %v1651_v59  ;;  %3725 = vmatprep.mubr.msk.bf16.mxu0 %vm3995_vm4, %v3994_v10 }
 0x43b   : >> { %v1632_v60 = vpop.xlane.xlu0 %1631 }
 0x43c   : >> { %v1654_v5 = vadd.f32 1e-06, %v1632_v60 }
 0x43f   : >> { %v1635_v63 = vpop.xlane.xlu1 %1634 }
 0x440   : >> { %v1655_v2 = vadd.f32 1e-06, %v1635_v63 }
 0x442   : >> { %3853 = vrcp.f32 %v1655_v2 }
 0x443   : >> { %3855 = vrcp.f32 %v1654_v5 }
 0x445   : >> { %v1647_v62 = vpop.xlane.xlu0 %1646 }
 0x446   : >> { %v1659_v17 = vadd.f32 1e-06, %v1647_v62 }
 0x449   : >> { %v1638_v0 = vpop.xlane.xlu0 %1637 }
 0x44a   : >> { %v1656_v12 = vadd.f32 1e-06, %v1638_v0 }
 0x44c   : >> { %v1644_v13 = vpop.xlane.xlu1 %1643  ;;  %3857 = vrcp.f32 %v1656_v12  ;;  %v3854_v25 = vpop.eup %3853 }
 0x44d   : >> { %v1641_v11 = vpop.xlane.xlu0 %1640  ;;  %v1658_v19 = vadd.f32 1e-06, %v1644_v13  ;;  %v3856_v28 = vpop.eup %3855 }
 0x44e   : >> { %v1657_v14 = vadd.f32 1e-06, %v1641_v11 }
 0x450   : >> { %3859 = vrcp.f32 %v1657_v14  ;;  %v1650_v20 = vpop.xlane.xlu1 %1649  ;;  %v3998_v14 = vmov 269488144  }
 0x451   : >> { %v1653_v21 = vpop.xlane.xlu0 %1652  ;;  %3861 = vrcp.f32 %v1659_v17  ;;  %v1660_v23 = vadd.f32 1e-06, %v1650_v20  ;;  %v3999_v17 = vmov 842150450   ;;  %v4001_v20 = vmov 1987475062  }
 0x452   : >> { %3863 = vrcp.f32 %v1658_v19  ;;  %v1661_v26 = vadd.f32 1e-06, %v1653_v21  ;;  %v4000_v19 = vmov 1414812756  }
 0x453   : >> { %3865 = vrcp.f32 %v1660_v23 }
 0x454   : >> { %3867 = vrcp.f32 %v1661_v26 }
 0x456   : >> { %v3858_v32 = vpop.eup %3857 }
 0x45a   : >> { %v3860_v36 = vpop.eup %3859 }
 0x45b   : >> { %v3862_v41 = vpop.eup %3861 }
 0x45c   : >> { %v3864_v45 = vpop.eup %3863 }
 0x45d   : >> { %v3866_v52 = vpop.eup %3865 }
 0x480   : >> { %v1752_v15 = vpop.f32.mrb[12].mxu1 }
 0x481   : >> { %v3673_v18 = vpop.f32.mrb[13].mxu1  ;;  %v2344_v30 = vmul.f32 %v3856_v28, %v1752_v15  ;;  %v2420_v15 = vunpack.c.l.s4 %v3998_v14 }
 0x482   : >> { %v2427_v18 = vunpack.c.l.s4 %v3999_v17 }
 0x483   : >> { %v2352_v38 = vadd.f32 %v3983_v1, %v2344_v30  ;;  %v2421_v21 = vunpack.c.0.s8 %v2420_v15 }
 0x484   : >> { %v1836_v22 = vpop.f32.mrb[8].mxu0 }
 0x485   : >> { %v3678_v24 = vpop.f32.mrb[9].mxu0  ;;  %v2345_v27 = vmul.f32 %v3854_v25, %v1836_v22  ;;  %v2428_v22 = vunpack.c.0.s8 %v2427_v18  ;;  %v4368_v25 = vsub.s32 %v2421_v21, %v4113_v16  ;;  %v3536_v18 = vld [vmem:[%s2362_s16] ss:$0 sm:$0xff]  ;;  %s2957_s16 = scalar_lea.vmem %s4622_s12, %s3987_s21 }
 0x487   : >> { %v4345_v34 = vadd.f32 %v3979_v6, %v2345_v27  ;;  %v4371_v26 = vsub.s32 %v2428_v22, %v4113_v16 }
 0x488   : >> { %v1920_v29 = vpop.f32.mrb[14].mxu1 }
 0x489   : >> { %v3683_v31 = vpop.f32.mrb[15].mxu1  ;;  %v2346_v35 = vmul.f32 %v3858_v32, %v1920_v29  ;;  %v2372_v42 = vcombine.low %v2352_v38, %v4345_v34 }
 0x48b   : >> { %v2354_v43 = vadd.f32 %v3975_v7, %v2346_v35  ;;  %v2380_v54 = vrot.slane %v2372_v42, %v4119_v33 }
 0x48c   : >> { %v2004_v37 = vpop.f32.mrb[10].mxu0 }
 0x48d   : >> { %v2347_v39 = vmul.f32 %v3860_v36, %v2004_v37  ;;  %v3688_v40 = vpop.f32.mrb[11].mxu0 }
 0x48f   : >> { %v2355_v44 = vadd.f32 %v3971_v9, %v2347_v39  ;;  %v3868_v9 = vpop.eup %3867 }
 0x490   : >> { %v2088_v46 = vpop.f32.mrb[16].mxu1  ;;  %v2172_v47 = vpop.f32.mrb[12].mxu0 }
 0x491   : >> { %v2373_v48 = vcombine.low %v2354_v43, %v2355_v44  ;;  %v2348_v6 = vmul.f32 %v3864_v45, %v2088_v46  ;;  %v2349_v49 = vmul.f32 %v3862_v41, %v2172_v47  ;;  %v3693_v50 = vpop.f32.mrb[17].mxu1  ;;  %v3698_v51 = vpop.f32.mrb[13].mxu0 }
 0x493   : >> { %v4352_v1 = vadd.f32 %v3967_v61, %v2348_v6  ;;  %v4355_v53 = vadd.f32 %v3963_v3, %v2349_v49  ;;  %v2387_v7 = vrot.slane %v2373_v48, %v4119_v33 }
 0x494   : >> { %v2256_v55 = vpop.f32.mrb[18].mxu1  ;;  %v2340_v56 = vpop.f32.mrb[14].mxu0 }
 0x495   : >> { %v2350_v57 = vmul.f32 %v3866_v52, %v2256_v55  ;;  %v2351_v58 = vmul.f32 %v3868_v9, %v2340_v56  ;;  %v3703_v59 = vpop.f32.mrb[19].mxu1  ;;  %v3708_v60 = vpop.f32.mrb[15].mxu0  ;;  %v2388_v62 = vcombine.low %v2380_v54, %v2387_v7  ;;  %v2389_v63 = vcombine.low %v4352_v1, %v4355_v53 }
 0x497   : >> { %v2358_v61 = vadd.f32 %v3959_v4, %v2350_v57  ;;  %v2359_v3 = vadd.f32 %v3955_v8, %v2351_v58  ;;  %v2408_v0 = vsel %vm844_vm5, %v2388_v62, 0.0  ;;  %v2397_v5 = vrot.slane %v2389_v63, %v4119_v33 }
 0x498   : >> { %2409 = vadd.xlane.f32.xlu1 %v2408_v0  ;;  %v2434_v4 = vunpack.c.l.s4 %v4000_v19  ;;  %v2441_v8 = vunpack.c.l.s4 %v4001_v20 }
 0x499   : >> { %v2390_v2 = vcombine.low %v2358_v61, %v2359_v3 }
 0x49a   : >> { %v2435_v23 = vunpack.c.0.s8 %v2434_v4  ;;  %v2442_v24 = vunpack.c.0.s8 %v2441_v8  ;;  %v2668_v8 = vcombine.high %v3536_v18, %v3536_v18 }
 0x49b   : >> { %v2404_v11 = vrot.slane %v2390_v2, %v4119_v33  ;;  %v3847_v2 = vld [vmem:[%s4183_s28] sm:$0xff]  }
 0x49c   : >> { %v4374_v27 = vsub.s32 %v2435_v23, %v4113_v16  ;;  %v4377_v28 = vsub.s32 %v2442_v24, %v4113_v16  ;;  %3710 = vmatpush3.bf16.msra.mxu1 %v3847_v2  ;;  %v2675_v24 = vrot.slane %v3536_v18, %v4119_v33 }
 0x49d   : >> { %v2405_v12 = vcombine.low %v2397_v5, %v2404_v11  ;;  %v3848_v5 = vld [vmem:[%s4183_s28 + $0x8] sm:$0xff]   ;;  %3711 = vmatprep.subr.bf16.mxu1 %v3994_v10  ;;  %v3849_v11 = vld [vmem:[%s4435_s25] sm:$0xff]   ;;  %s2360_s28 = scalar_lea.vmem %s4619_s9, %s3987_s21 }
 0x49e   : >> { %3718 = vmatpush3.bf16.msra.mxu0 %v3849_v11  ;;  %v3535_v17 = vld [vmem:[%s2360_s28] ss:$0 sm:$0xff]  ;;  %s2955_s28 = scalar_lea.vmem %s4621_s11, %s3987_s21 }
 0x49f   : >> { %v2411_v13 = vsel %vm844_vm5, %v2405_v12, 0.0  ;;  %v3850_v12 = vld [vmem:[%s4435_s25 + $0x8] sm:$0xff]   ;;  %3719 = vmatprep.subr.bf16.mxu0 %v3994_v10  ;;  %v2634_v4 = vcombine.high %v3535_v17, %v3535_v17  ;;  %v2641_v22 = vrot.slane %v3535_v17, %v4119_v33 }
 0x4a0   : >> { %2412 = vadd.xlane.f32.xlu0 %v2411_v13  ;;  %3712 = vmatpush3.bf16.msra.mxu1 %v3848_v5 }
 0x4a1   : >> { %v2648_v23 = vrot.slane %v2634_v4, %v4119_v33  ;;  %v3851_v4 = vld [vmem:[%s4435_s25 + $0x10] sm:$0xff]  }
 0x4a2   : >> { %3720 = vmatpush3.bf16.msra.mxu0 %v3850_v12 }
 0x4a3   : >> { %3721 = vmatprep.subr.bf16.mxu0 %v3994_v10 }
 0x4a6   : >> { %3722 = vmatpush3.bf16.msra.mxu0 %v3851_v4 }
 0x4a7   : >> { %3723 = vmatprep.subr.bf16.mxu0 %v3994_v10 }
 0x525   : >> { %v2410_v29 = vpop.xlane.xlu1 %2409 }
 0x526   : >> { %v2415_v30 = vmul.f32 0.03125, %v2410_v29  ;;  %v2682_v29 = vrot.slane %v2668_v8, %v4119_v33  ;;  %v3538_v8 = vld [vmem:[%s2748_s22] ss:$0 sm:$0xff] }
 0x528   : >> { %v2425_v31 = vrot.slane %v2415_v30, %v4368_v25  ;;  %v2432_v32 = vrot.slane %v2415_v30, %v4371_v26  ;;  %v2439_v35 = vrot.slane %v2415_v30, %v4374_v27  ;;  %v2446_v36 = vrot.slane %v2415_v30, %v4377_v28 }
 0x52a   : >> { %v4383_v37 = vsub.f32 %v2352_v38, %v2425_v31  ;;  %v4386_v39 = vsub.f32 %v4345_v34, %v2432_v32  ;;  %v4388_v40 = vsub.f32 %v2354_v43, %v2439_v35  ;;  %v4390_v41 = vsub.f32 %v2355_v44, %v2446_v36 }
 0x52b   : >> { %v2649_v31 = vcombine.high %v2641_v22, %v2641_v22  ;;  %v2650_v32 = vcombine.high %v2648_v23, %v2648_v23 }
 0x52c   : >> { %v2491_v42 = vmul.f32 %v4383_v37, %v4383_v37  ;;  %v2492_v45 = vmul.f32 %v4386_v39, %v4386_v39  ;;  %v2493_v46 = vmul.f32 %v4388_v40, %v4388_v40  ;;  %v2494_v38 = vmul.f32 %v4390_v41, %v4390_v41 }
 0x52d   : >> { %v2413_v47 = vpop.xlane.xlu0 %2412 }
 0x52e   : >> { %v2416_v48 = vmul.f32 0.03125, %v2413_v47  ;;  %v2507_v34 = vcombine.low %v2491_v42, %v2492_v45  ;;  %v2508_v6 = vcombine.low %v2493_v46, %v2494_v38  ;;  %v2683_v46 = vcombine.high %v2675_v24, %v2675_v24 }
 0x52f   : >> { %v2684_v38 = vcombine.high %v2682_v29, %v2682_v29 }
 0x530   : >> { %v2453_v43 = vrot.slane %v2416_v48, %v4368_v25  ;;  %v2460_v44 = vrot.slane %v2416_v48, %v4371_v26  ;;  %v2467_v49 = vrot.slane %v2416_v48, %v4374_v27  ;;  %v2474_v50 = vrot.slane %v2416_v48, %v4377_v28 }
 0x531   : >> { %v2515_v51 = vrot.slane %v2507_v34, %v4119_v33  ;;  %v2522_v52 = vrot.slane %v2508_v6, %v4119_v33 }
 0x532   : >> { %v4407_v54 = vsub.f32 %v4352_v1, %v2453_v43  ;;  %v4410_v7 = vsub.f32 %v4355_v53, %v2460_v44  ;;  %v4412_v9 = vsub.f32 %v2358_v61, %v2467_v49  ;;  %v4414_v55 = vsub.f32 %v2359_v3, %v2474_v50 }
 0x533   : >> { %v2523_v56 = vcombine.low %v2515_v51, %v2522_v52 }
 0x534   : >> { %v2495_v57 = vmul.f32 %v4407_v54, %v4407_v54  ;;  %v2496_v58 = vmul.f32 %v4410_v7, %v4410_v7  ;;  %v2497_v1 = vmul.f32 %v4412_v9, %v4412_v9  ;;  %v2498_v53 = vmul.f32 %v4414_v55, %v4414_v55 }
 0x535   : >> { %v2543_v59 = vsel %vm844_vm5, %v2523_v56, 0.0 }
 0x536   : >> { %2544 = vadd.xlane.f32.xlu1 %v2543_v59  ;;  %v2524_v60 = vcombine.low %v2495_v57, %v2496_v58  ;;  %v2525_v62 = vcombine.low %v2497_v1, %v2498_v53 }
 0x538   : >> { %v2532_v63 = vrot.slane %v2524_v60, %v4119_v33  ;;  %v2539_v61 = vrot.slane %v2525_v62, %v4119_v33 }
 0x53a   : >> { %v2540_v3 = vcombine.low %v2532_v63, %v2539_v61 }
 0x53c   : >> { %v2546_v0 = vsel %vm844_vm5, %v2540_v3, 0.0 }
 0x53d   : >> { %2547 = vadd.xlane.f32.xlu0 %v2546_v0 }
 0x5c3   : >> { %v2545_v13 = vpop.xlane.xlu1 %2544 }
 0x5c4   : >> { %v2549_v14 = vmul.f32 0.03125, %v2545_v13 }
 0x5c6   : >> { %v2551_v15 = vadd.f32 1e-05, %v2549_v14 }
 0x5c8   : >> { %3869 = vrsqrt.f32 %v2551_v15 }
 0x5ca   : >> { %v2548_v19 = vpop.xlane.xlu0 %2547 }
 0x5cb   : >> { %v2550_v20 = vmul.f32 0.03125, %v2548_v19 }
 0x5cd   : >> { %v2552_v21 = vadd.f32 1e-05, %v2550_v20  ;;  %v3852_v20 = vld [vmem:[%s4435_s25 + $0x18] sm:$0xff]   ;;  %s2826_s25 = scalar_lea.vmem %s4618_s8, %s3987_s21  ;;  %s763_s21 = sadd.s32 1, %s3987_s21  }
 0x5ce   : >> { %3724 = vmatpush3.bf16.msra.mxu0 %v3852_v20  ;;  %v3544_v10 = vld [vmem:[%s2826_s25] ss:$0 sm:$0xff]  ;;  %p760_p6 = scmp.ge.s32.totalorder %s763_s21, 2  }
 0x5cf   : >> { %3871 = vrsqrt.f32 %v2552_v21  ;;  %vm3292_vm10 = vcmask (%p760_p6), 254976   ;;  %p3552_p7 = scmp.ne.s32.totalorder (%p760_p6), %s4091_s19, 1 }
 0x5d2   : >> { %v3870_v30 = vpop.eup %3869 }
 0x5d3   : >> { %v2563_v35 = vrot.slane %v3870_v30, %v4368_v25  ;;  %v2570_v36 = vrot.slane %v3870_v30, %v4371_v26  ;;  %v2577_v42 = vrot.slane %v3870_v30, %v4374_v27  ;;  %v2584_v45 = vrot.slane %v3870_v30, %v4377_v28 }
 0x5d5   : >> { %v2621_v47 = vmul.f32 %v2563_v35, %v4383_v37  ;;  %v2622_v48 = vmul.f32 %v2570_v36, %v4386_v39  ;;  %v2623_v34 = vmul.f32 %v2577_v42, %v4388_v40  ;;  %v2624_v6 = vmul.f32 %v2584_v45, %v4390_v41 }
 0x5d7   : >> { %v2655_v43 = vmul.f32 %v2641_v22, %v2621_v47  ;;  %v2656_v44 = vmul.f32 %v2649_v31, %v2622_v48  ;;  %v2657_v49 = vmul.f32 %v2648_v23, %v2623_v34  ;;  %v2658_v50 = vmul.f32 %v2650_v32, %v2624_v6 }
 0x5d9   : >> { %v3872_v51 = vpop.eup %3871  ;;  %v4461_v52 = vadd.f32 %v2675_v24, %v2655_v43  ;;  %v4463_v56 = vadd.f32 %v2683_v46, %v2656_v44  ;;  %v4465_v57 = vadd.f32 %v2682_v29, %v2657_v49  ;;  %v4467_v58 = vadd.f32 %v2684_v38, %v2658_v50 }
 0x5da   : >> { %v2591_v37 = vrot.slane %v3872_v51, %v4368_v25  ;;  %v2598_v39 = vrot.slane %v3872_v51, %v4371_v26  ;;  %v2605_v40 = vrot.slane %v3872_v51, %v4374_v27  ;;  %v2612_v41 = vrot.slane %v3872_v51, %v4377_v28 }
 0x5db   : >> { %v2705_v62 = vcombine.low %v4461_v52, %v4463_v56  ;;  %v2706_v63 = vcombine.low %v4465_v57, %v4467_v58 }
 0x5dc   : >> { %v2625_v1 = vmul.f32 %v2591_v37, %v4407_v54  ;;  %v2626_v53 = vmul.f32 %v2598_v39, %v4410_v7  ;;  %v2627_v59 = vmul.f32 %v2605_v40, %v4412_v9  ;;  %v2628_v60 = vmul.f32 %v2612_v41, %v4414_v55 }
 0x5dd   : >> { %v2713_v9 = vrot.slane %v2705_v62, %v4119_v33  ;;  %v2720_v55 = vrot.slane %v2706_v63, %v4119_v33 }
 0x5de   : >> { %v2659_v61 = vmul.f32 %v2641_v22, %v2625_v1  ;;  %v2660_v3 = vmul.f32 %v2649_v31, %v2626_v53  ;;  %v2661_v0 = vmul.f32 %v2648_v23, %v2627_v59  ;;  %v2662_v2 = vmul.f32 %v2650_v32, %v2628_v60 }
 0x5df   : >> { %v2721_v17 = vcombine.low %v2713_v9, %v2720_v55 }
 0x5e0   : >> { %v2693_v5 = vadd.f32 %v2675_v24, %v2659_v61  ;;  %v2694_v11 = vadd.f32 %v2683_v46, %v2660_v3  ;;  %v2695_v54 = vadd.f32 %v2682_v29, %v2661_v0  ;;  %v2696_v7 = vadd.f32 %v2684_v38, %v2662_v2 }
 0x5e2   : >> { %v2722_v12 = vcombine.low %v2693_v5, %v2694_v11  ;;  %v2723_v13 = vcombine.low %v2695_v54, %v2696_v7 }
 0x5e4   : >> { %v2730_v14 = vrot.slane %v2722_v12, %v4119_v33  ;;  %v2737_v15 = vrot.slane %v2723_v13, %v4119_v33 }
 0x5e6   : >> { %v2738_v18 = vcombine.low %v2730_v14, %v2737_v15 }
 0x5e8   : >> { %v2741_v19 = vpack.c.bf16 %v2738_v18, %v2721_v17 }
 0x5ea   : >> { %3714 = vmatmul.mubr.msk.bf16.vlgmr.msra.gmra.mrb[20].mxu1 %vm844_vm5, %v2741_v19 }
 0x6bd   : >> { %v2805_v21 = vpop.f32.mrb[20].mxu1 }
 0x6be   : >> { %v2806_v22 = vadd.f32 %v3538_v8, %v2805_v21  ;;  %v3715_v23 = vpop.f32.mrb[21].mxu1 }
 0x6bf   : >> { %v2808_v24 = vpop.f32.mrb[22].mxu1 }
 0x6c0   : >> { %v2809_v29 = vadd.f32 %v3538_v8, %v2808_v24  ;;  %v3716_v30 = vpop.f32.mrb[23].mxu1  ;;  %v2812_v31 = vmax.f32 %v2806_v22, 0.0 }
 0x6c2   : >> { %v2813_v32 = vmax.f32 %v2809_v29, 0.0 }
 0x6c4   : >> { %v2814_v35 = vpack.c.bf16 %v2813_v32, %v2812_v31 }
 0x6c6   : >> { %3726 = vmatmul.mubr.msk.bf16.vlgmr.msra.gmra.mrb[16].mxu0 %vm2858_vm9, %v2814_v35 }
 0x799   : >> { %v2896_v36 = vpop.f32.mrb[16].mxu0 }
 0x79a   : >> { %v2897_v42 = vadd.f32 %v3544_v10, %v2896_v36  ;;  %v3727_v45 = vpop.f32.mrb[17].mxu0 }
 0x79b   : >> { %v2899_v46 = vpop.f32.mrb[18].mxu0 }
 0x79c   : >> { %v2905_v38 = vcombine.high %v2897_v42, %v2897_v42  ;;  %v2912_v47 = vrot.slane %v2897_v42, %v4119_v33  ;;  %v2900_v48 = vadd.f32 %v3544_v10, %v2899_v46  ;;  %v3728_v34 = vpop.f32.mrb[19].mxu0 }
 0x79e   : >> { %v2919_v6 = vrot.slane %v2905_v38, %v4119_v33  ;;  %v2920_v43 = vcombine.high %v2912_v47, %v2912_v47  ;;  %v2922_v44 = vcombine.high %v2900_v48, %v2900_v48  ;;  %v2929_v49 = vrot.slane %v2900_v48, %v4119_v33 }
 0x79f   : >> { %v2947_v51 = vadd.f32 %v2912_v47, %v4461_v52 }
 0x7a0   : >> { %v2921_v50 = vcombine.high %v2919_v6, %v2919_v6  ;;  %v2948_v37 = vadd.f32 %v2920_v43, %v4463_v56  ;;  %v2936_v39 = vrot.slane %v2922_v44, %v4119_v33  ;;  %v2937_v40 = vcombine.high %v2929_v49, %v2929_v49 }
 0x7a1   : >> { %v2949_v41 = vadd.f32 %v2919_v6, %v4465_v57  ;;  %v2951_v60 = vadd.f32 %v2929_v49, %v2693_v5 }
 0x7a2   : >> { %v2938_v1 = vcombine.high %v2936_v39, %v2936_v39  ;;  %v2950_v53 = vadd.f32 %v2921_v50, %v4467_v58  ;;  %v2967_v59 = vcombine.low %v2947_v51, %v2948_v37  ;;  %v2952_v62 = vadd.f32 %v2937_v40, %v2694_v11 }
 0x7a3   : >> { %v2953_v63 = vadd.f32 %v2936_v39, %v2695_v54 }
 0x7a4   : >> { %v2968_v61 = vcombine.low %v2949_v41, %v2950_v53  ;;  %v2954_v3 = vadd.f32 %v2938_v1, %v2696_v7  ;;  %v2984_v0 = vcombine.low %v2951_v60, %v2952_v62  ;;  %v2975_v2 = vrot.slane %v2967_v59, %v4119_v33 }
 0x7a6   : >> { %v2982_v52 = vrot.slane %v2968_v61, %v4119_v33  ;;  %v2985_v56 = vcombine.low %v2953_v63, %v2954_v3  ;;  %v2992_v55 = vrot.slane %v2984_v0, %v4119_v33  ;;  %v3551_v61 = vld [vmem:[%s2957_s16] ss:$0 sm:$0xff] }
 0x7a8   : >> { %v2983_v9 = vcombine.low %v2975_v2, %v2982_v52  ;;  %v2999_v57 = vrot.slane %v2985_v56, %v4119_v33  ;;  %v3262_v2 = vcombine.high %v3551_v61, %v3551_v61 }
 0x7aa   : >> { %v3003_v12 = vsel %vm844_vm5, %v2983_v9, 0.0  ;;  %v3000_v58 = vcombine.low %v2992_v55, %v2999_v57  ;;  %v3269_v9 = vrot.slane %v3551_v61, %v4119_v33  ;;  %v3276_v55 = vrot.slane %v3262_v2, %v4119_v33 }
 0x7ab   : >> { %3004 = vadd.xlane.f32.xlu1 %v3003_v12 }
 0x7ac   : >> { %v3006_v5 = vsel %vm844_vm5, %v3000_v58, 0.0 }
 0x7ad   : >> { %3007 = vadd.xlane.f32.xlu0 %v3006_v5 }
 0x838   : >> { %v3005_v11 = vpop.xlane.xlu1 %3004 }
 0x839   : >> { %v3009_v54 = vmul.f32 0.03125, %v3005_v11 }
 0x83a   : >> { %v3008_v7 = vpop.xlane.xlu0 %3007 }
 0x83b   : >> { %v3019_v13 = vrot.slane %v3009_v54, %v4368_v25  ;;  %v3026_v14 = vrot.slane %v3009_v54, %v4371_v26  ;;  %v3033_v15 = vrot.slane %v3009_v54, %v4374_v27  ;;  %v3040_v17 = vrot.slane %v3009_v54, %v4377_v28 }
 0x83c   : >> { %v3010_v18 = vmul.f32 0.03125, %v3008_v7 }
 0x83d   : >> { %v3077_v19 = vsub.f32 %v2947_v51, %v3019_v13  ;;  %v3078_v4 = vsub.f32 %v2948_v37, %v3026_v14  ;;  %v3079_v20 = vsub.f32 %v2949_v41, %v3033_v15  ;;  %v3080_v8 = vsub.f32 %v2950_v53, %v3040_v17 }
 0x83e   : >> { %v3047_v21 = vrot.slane %v3010_v18, %v4368_v25  ;;  %v3054_v22 = vrot.slane %v3010_v18, %v4371_v26  ;;  %v3061_v23 = vrot.slane %v3010_v18, %v4374_v27  ;;  %v3068_v24 = vrot.slane %v3010_v18, %v4377_v28 }
 0x83f   : >> { %v3085_v29 = vmul.f32 %v3077_v19, %v3077_v19  ;;  %v3086_v30 = vmul.f32 %v3078_v4, %v3078_v4  ;;  %v3087_v31 = vmul.f32 %v3079_v20, %v3079_v20  ;;  %v3088_v32 = vmul.f32 %v3080_v8, %v3080_v8 }
 0x840   : >> { %v3081_v35 = vsub.f32 %v2951_v60, %v3047_v21  ;;  %v3082_v10 = vsub.f32 %v2952_v62, %v3054_v22  ;;  %v3083_v36 = vsub.f32 %v2953_v63, %v3061_v23  ;;  %v3084_v42 = vsub.f32 %v2954_v3, %v3068_v24  ;;  %v3550_v62 = vld [vmem:[%s2955_s28] ss:$0 sm:$0xff] }
 0x841   : >> { %v3101_v45 = vcombine.low %v3085_v29, %v3086_v30  ;;  %v3102_v46 = vcombine.low %v3087_v31, %v3088_v32  ;;  %v3228_v0 = vcombine.high %v3550_v62, %v3550_v62  ;;  %v3235_v52 = vrot.slane %v3550_v62, %v4119_v33 }
 0x842   : >> { %v3089_v38 = vmul.f32 %v3081_v35, %v3081_v35  ;;  %v3090_v47 = vmul.f32 %v3082_v10, %v3082_v10  ;;  %v3091_v48 = vmul.f32 %v3083_v36, %v3083_v36  ;;  %v3092_v34 = vmul.f32 %v3084_v42, %v3084_v42 }
 0x843   : >> { %v3109_v6 = vrot.slane %v3101_v45, %v4119_v33  ;;  %v3116_v43 = vrot.slane %v3102_v46, %v4119_v33  ;;  %v3242_v56 = vrot.slane %v3228_v0, %v4119_v33  ;;  %v3243_v12 = vcombine.high %v3235_v52, %v3235_v52 }
 0x844   : >> { %v3118_v44 = vcombine.low %v3089_v38, %v3090_v47  ;;  %v3119_v49 = vcombine.low %v3091_v48, %v3092_v34  ;;  %v3277_v13 = vcombine.high %v3269_v9, %v3269_v9  ;;  %v3278_v14 = vcombine.high %v3276_v55, %v3276_v55 }
 0x845   : >> { %v3117_v50 = vcombine.low %v3109_v6, %v3116_v43  ;;  %v3244_v58 = vcombine.high %v3242_v56, %v3242_v56 }
 0x846   : >> { %v3126_v51 = vrot.slane %v3118_v44, %v4119_v33  ;;  %v3133_v37 = vrot.slane %v3119_v49, %v4119_v33 }
 0x847   : >> { %v3137_v39 = vsel %vm844_vm5, %v3117_v50, 0.0 }
 0x848   : >> { %3138 = vadd.xlane.f32.xlu1 %v3137_v39  ;;  %v3134_v40 = vcombine.low %v3126_v51, %v3133_v37 }
 0x84a   : >> { %v3140_v41 = vsel %vm844_vm5, %v3134_v40, 0.0 }
 0x84b   : >> { %3141 = vadd.xlane.f32.xlu0 %v3140_v41 }
 0x8d5   : >> { %v3139_v1 = vpop.xlane.xlu1 %3138 }
 0x8d6   : >> { %v3143_v53 = vmul.f32 0.03125, %v3139_v1 }
 0x8d8   : >> { %v3145_v59 = vadd.f32 1e-05, %v3143_v53  ;;  %v3142_v60 = vpop.xlane.xlu0 %3141 }
 0x8d9   : >> { %v3144_v63 = vmul.f32 0.03125, %v3142_v60 }
 0x8da   : >> { %3873 = vrsqrt.f32 %v3145_v59 }
 0x8db   : >> { %v3146_v3 = vadd.f32 1e-05, %v3144_v63 }
 0x8dd   : >> { %3875 = vrsqrt.f32 %v3146_v3 }
 0x8e4   : >> { %v3874_v57 = vpop.eup %3873 }
 0x8e5   : >> { %v3157_v5 = vrot.slane %v3874_v57, %v4368_v25  ;;  %v3164_v11 = vrot.slane %v3874_v57, %v4371_v26  ;;  %v3171_v54 = vrot.slane %v3874_v57, %v4374_v27  ;;  %v3178_v7 = vrot.slane %v3874_v57, %v4377_v28 }
 0x8e7   : >> { %v3876_v15 = vpop.eup %3875  ;;  %v3215_v17 = vmul.f32 %v3157_v5, %v3077_v19  ;;  %v3216_v18 = vmul.f32 %v3164_v11, %v3078_v4  ;;  %v3217_v21 = vmul.f32 %v3171_v54, %v3079_v20  ;;  %v3218_v22 = vmul.f32 %v3178_v7, %v3080_v8 }
 0x8e8   : >> { %v3185_v23 = vrot.slane %v3876_v15, %v4368_v25  ;;  %v3192_v24 = vrot.slane %v3876_v15, %v4371_v26  ;;  %v3199_v29 = vrot.slane %v3876_v15, %v4374_v27  ;;  %v3206_v30 = vrot.slane %v3876_v15, %v4377_v28 }
 0x8e9   : >> { %v3249_v31 = vmul.f32 %v3235_v52, %v3215_v17  ;;  %v3250_v32 = vmul.f32 %v3243_v12, %v3216_v18  ;;  %v3251_v45 = vmul.f32 %v3242_v56, %v3217_v21  ;;  %v3252_v46 = vmul.f32 %v3244_v58, %v3218_v22 }
 0x8ea   : >> { %v3219_v38 = vmul.f32 %v3185_v23, %v3081_v35  ;;  %v3220_v47 = vmul.f32 %v3192_v24, %v3082_v10  ;;  %v3221_v48 = vmul.f32 %v3199_v29, %v3083_v36  ;;  %v3222_v34 = vmul.f32 %v3206_v30, %v3084_v42  ;;  %762 = sbr.rel (!%p760_p6) target bundleno = 379 (0x17b), region = 135 }
 0x8eb   : >> { %v3283_v19 = vadd.f32 %v3269_v9, %v3249_v31   ;;  %v3284_v43 = vadd.f32 %v3277_v13, %v3250_v32   ;;  %v3285_v20 = vadd.f32 %v3276_v55, %v3251_v45   ;;  %v3286_v44 = vadd.f32 %v3278_v14, %v3252_v46  }
 0x8ec   : >> { %v3253_v4 = vmul.f32 %v3235_v52, %v3219_v38  ;;  %v3254_v25 = vmul.f32 %v3243_v12, %v3220_v47  ;;  %v3255_v8 = vmul.f32 %v3242_v56, %v3221_v48  ;;  %v3256_v26 = vmul.f32 %v3244_v58, %v3222_v34 }
 0x8ed   : >> { %v4631_v7 = vmov %v3285_v20  ;;  %v4632_v6 = vmov %v3284_v43  ;;  %v4633_v1 = vmov %v3283_v19  ;;  %v3293_v35 = vsel (%p760_p6), %vm3292_vm10, %v3283_v19, 0.0 }
 0x8ee   : >> { %v3287_v49 = vadd.f32 %v3269_v9, %v3253_v4   ;;  %v3288_v27 = vadd.f32 %v3277_v13, %v3254_v25   ;;  %v3289_v50 = vadd.f32 %v3276_v55, %v3255_v8   ;;  %v3290_v28 = vadd.f32 %v3278_v14, %v3256_v26   ;;  %v3291_v6 = vld [vmem:[#allocation2] sm:$0x3] (%p760_p6) }
 0x8ef   : >> { %v4630_v9 = vmov %v3286_v44  ;;  %v3294_v10 = vsel (%p760_p6), %vm3292_vm10, %v3284_v43, 0.0  ;;  %v3296_v36 = vsel (%p760_p6), %vm3292_vm10, %v3285_v20, 0.0  ;;  %v3298_v51 = vsel (%p760_p6), %vm3292_vm10, %v3286_v44, 0.0 }
 0x8f0   : >> { %v4626_v8 = vmov %v3290_v28  ;;  %v4627_v4 = vmov %v3289_v50  ;;  %v4628_v3 = vmov %v3288_v27  ;;  %v4629_v61 = vmov %v3287_v49 }
 0x8f1   : > { %v3295_v42 = vadd.f32 %v3294_v10, %v3293_v35  ;;  %v3300_v39 = vsel %vm3292_vm10, %v3287_v49, 0.0  ;;  %v3302_v41 = vsel %vm3292_vm10, %v3288_v27, 0.0  ;;  %v3304_v53 = vsel %vm3292_vm10, %v3289_v50, 0.0  ;;  %v3877_v63 = vld [vmem:[%s4623_s13] sm:$0xff] (!%p3552_p7)   ;;  %v3878_v3 = vld [vmem:[%s4623_s13 + $0x8] sm:$0xff] (!%p3552_p7)  }
 0x8f2   : > { %v3306_v16 = vsel %vm3292_vm10, %v3290_v28, 0.0  ;;  %v4002_v61 = vmov (!%p3552_p7), 0.0   ;;  %vm4003_vm11 = vmmov (!%p3552_p7), 0   ;;  %v3553_v56 = vld [vmem:[%s4624_s14] ss:$0 sm:$0xff] (!%p3552_p7) }
 0x8f3   : > { %v3297_v37 = vadd.f32 %v3296_v36, %v3295_v42  ;;  %3729 = vmatprep.subr.bf16.mxu0 (!%p3552_p7), %v4002_v61  ;;  %3733 = vmatprep.mubr.msk.bf16.mxu0 (!%p3552_p7), %vm4003_vm11, %v4002_v61 }
 0x8f4   : > { %3730 = vmatpush3.bf16.msra.mxu0 (!%p3552_p7), %v3877_v63 }
 0x8f5   : > { %v3299_v40 = vadd.f32 %v3298_v51, %v3297_v37  ;;  %3731 = vmatprep.subr.bf16.mxu0 (!%p3552_p7), %v4002_v61 }
 0x8f7   : > { %v3301_v1 = vadd.f32 %v3300_v39, %v3299_v40 }
 0x8f8   : > { %3732 = vmatpush3.bf16.msra.mxu0 (!%p3552_p7), %v3878_v3 }
 0x8f9   : > { %v3303_v59 = vadd.f32 %v3302_v41, %v3301_v1 }
 0x8fb   : > { %v3305_v33 = vadd.f32 %v3304_v53, %v3303_v59  ;;  %3313 = sbr.rel (%p3552_p7) target bundleno = 2532 (0x9e4), region = 95 }
 0x8fd   : > { %v3307_v60 = vadd.f32 %v3306_v16, %v3305_v33 }
 0x8ff   : > { %v3308_v62 = vadd.f32 %v3307_v60, %v3291_v6 }
 0x901   : > { %3309 = vst.msk [vmem:[#allocation2] sm:$0x3] %vm3292_vm10, %v3308_v62 }
 0x908   : > { %v3314_v0 = vld [vmem:[#allocation2] sm:$0x3] }
 0x909   : > { %v3315_v2 = vmul.f32 0.0625, %v3314_v0 }
 0x90b   : > { %v3316_v52 = vpack.c.bf16 %v3315_v2, %v3315_v2 }
 0x90d   : > { %3734 = vmatmul.mubr.msk.bf16.vlgmr.msra.gmra.mrb[0].mxu0 %vm844_vm5, %v3316_v52 }
 0x9e0   : > { %v3378_v9 = vpop.f32.mrb[0].mxu0 }
 0x9e1   : > { %v3379_v55 = vadd.f32 %v3553_v56, %v3378_v9  ;;  %v3735_v57 = vpop.f32.mrb[1].mxu0 }
 0x9e2   : > { %v3381_v12 = vpop.f32.mrb[2].mxu0 }
 0x9e3   : > { %3384 = vst [vmem:[#allocation3] sm:$0x3] %v3379_v55  ;;  %v3736_v58 = vpop.f32.mrb[3].mxu0 }
 0x9e4 PF: > { %p3745_p8 = scmp.eq.s32.totalorder %s4091_s19, 1  ;;  %s4004_s25 = smov [#allocation3]  }
 0x9e5   : > { %s3392_s26 = sshll.u32 %s4004_s25, 4  ;;  %s3393_s26 = int_to_ptr.vmem [resolvable:$true] %s3392_s26 }
 0x9e6   : > { %s3879_s27 = scalar_lea.vmem %s3393_s26, 32  ;;  %p3886_p12 = scmp.lt.s32.totalorder %s3393_s26, %s3393_s26 }
 0x9e7   : > { %p3880_p9 = scmp.ne.s32.totalorder %s3393_s26, %s3879_s27  ;;  %p3887_p13 = scmp.lt.s32.totalorder %s3879_s27, %s3879_s27 }
 0x9e9   : > { %p3881_p10 = pnand %p3880_p9, %p3745_p8  ;;  %p3888_p0 = por %p3887_p13, %p3886_p12 }
 0x9eb   : > { %p3882_p11 = pneg %p3881_p10 }
 0x9ed   : > { %p3889_p1 = pnand %p3888_p0, %p3882_p11 }
 0x9ef   : > { %3892 = shalt.err (!%p3889_p1)
}
 0x9f0   : > { %s3893_s30 = scalar_lea.hbm %s4625_s15, 32 }
 0x9f1   : > { %p3894_p2 = scmp.ne.s32.totalorder %s4625_s15, %s3893_s30  ;;  %p3899_p5 = scmp.lt.u32.totalorder %s3893_s30, %s4625_s15 }
 0x9f3   : > { %p3895_p3 = pnand %p3894_p2, %p3745_p8 }
 0x9f5   : > { %p3896_p4 = pneg %p3895_p3 }
 0x9f7   : > { %p3901_p6 = pnand %p3899_p5, %p3896_p4 }
 0x9f9   : > { %3904 = shalt.err (!%p3901_p6)
}
 0x9fa   : > { %3742 = dma.vmem_to_hbm [thread:$0]  (%p3745_p8), %s3393_s26, 32, %s4625_s15, [#allocation4]  }
 0x9fb   : > { %3946 = dma.done.wait (%p3745_p8), [#allocation4], 32  }
 0x9fc   : > { %3948 = vsyncadd (%p3745_p8), [#allocation4], 4294967264 }
 0x9fd PF: > { %s26_s18 = sadd.s32 1, %s3951_s18  }
 0x9fe   : > { %p23_p7 = scmp.ge.s32.totalorder %s26_s18, 4  }
 0xa00   :  { %25 = sbr.rel (!%p23_p7) target bundleno = 1 (0x1), region = 146 }
 0xa07   :  { %3405 = vsyncpa [#allocation4], 1 }
 0xa08   :  { %3407 = vsyncpa [#allocation4 + $0x1], 1 }

</bundles_post_ra>
